<compile_context>
chip_gen: v7x
topology: tpu7x:2x2x1
jax: 0.10.0
libtpu: 0.0.40
codegen_flags: <defaults>
</compile_context>

<pallas_src>
import math

import jax
import jax.numpy as jnp
from jax import lax
from jax.experimental import pallas as pl
from jax.experimental.pallas import tpu as pltpu


_LOG3 = math.log(3.0)
_INV_SQRT_2PI = 1.0 / math.sqrt(2.0 * math.pi)

# bf16 operands on the MXU (f32 accumulation).  Sigma/prior stay on an exact f32 path.
USE_BF16_MXU = True


def _make_kernel(H, E, D, compute_dtype):
    scale = 1.0 / math.sqrt(E)

    def kernel(x_ref, k_ref, v_ref,
               wq_ref, bq_ref, wk_ref, bk_ref, wv_ref, bv_ref,
               ws_ref, bs_ref, wo_ref, bo_ref, dist2_ref, mask_ref,
               out_ref, series_ref, prior_ref, sigma_ref):
        x = x_ref[0]                      # (L, d_model) f32 (sigma path needs f32)
        kin = k_ref[0]                    # (S_pad, d_model) compute_dtype
        vin = v_ref[0]                    # (S_pad, d_model) compute_dtype

        xc = x.astype(compute_dtype)

        # --- full-width projections: contraction = d_model, output = H*E / H*D ---
        q_all = jnp.dot(xc, wq_ref[...], preferred_element_type=jnp.float32) + bq_ref[...]
        k_all = jnp.dot(kin, wk_ref[...], preferred_element_type=jnp.float32) + bk_ref[...]
        v_all = jnp.dot(vin, wv_ref[...], preferred_element_type=jnp.float32) + bv_ref[...]

        head_outs = []
        for h in range(H):                # static unroll -> static slices only
            qh = q_all[:, h * E:(h + 1) * E].astype(compute_dtype)      # (L, E)
            kh = k_all[:, h * E:(h + 1) * E].astype(compute_dtype)      # (S_pad, E)
            vh = v_all[:, h * D:(h + 1) * D].astype(compute_dtype)      # (S_pad, D)

            # scores + masked, numerically stable softmax along S
            scores = lax.dot_general(qh, kh, (((1,), (1,)), ((), ())),
                                     preferred_element_type=jnp.float32) * scale
            scores = scores + mask_ref[...]                # -1e30 on padded key columns
            m = jnp.max(scores, axis=-1, keepdims=True)
            e = jnp.exp(scores - m)
            denom = jnp.sum(e, axis=-1, keepdims=True)
            series_h = e * pl.reciprocal(denom, approx=True)            # (L, S_pad)

            # sigma projection for this head (exact f32: VPU mul + lane reduce)
            sig_col = jnp.sum(x * ws_ref[h], axis=-1, keepdims=True) + bs_ref[h]   # (L, 1)
            sg = jnp.exp((jax.nn.sigmoid(sig_col * 5.0) + 1e-5) * _LOG3) - 1.0     # (L, 1)

            # prior: gaussian over |i-j|; per-row constants on (L,1), no (L,S) divisions
            inv_sig = pl.reciprocal(sg, approx=False)                   # (L, 1)
            coef = _INV_SQRT_2PI * inv_sig
            neg_half_inv_sig2 = -0.5 * inv_sig * inv_sig
            prior_h = coef * jnp.exp(dist2_ref[...] * neg_half_inv_sig2)  # (L, S_pad)

            series_ref[0, h] = series_h
            prior_ref[0, h] = prior_h
            sigma_ref[0, h] = sg                                        # (L, 1), no slab

            head_outs.append(jnp.dot(series_h.astype(compute_dtype), vh,
                                     preferred_element_type=jnp.float32))  # (L, D)

        # single full-contraction output projection, written once
        attn = jnp.concatenate(head_outs, axis=-1)                       # (L, H*D)
        out_ref[0] = jnp.dot(attn.astype(compute_dtype), wo_ref[...],
                             preferred_element_type=jnp.float32) + bo_ref[...]

    return kernel


def attention_layer(params, queries, keys, values, attn_mask=None):
    """Pallas implementation of AttentionLayer.forward (inner attention = AnomalyAttention)."""
    # TODO(synk): attn_mask (mask_flag=True) path not implemented; ignored as in
    #             AnomalyAttention(mask_flag=False).
    del attn_mask
    B, L, d_model = queries.shape
    _, S, _ = keys.shape
    H = int(params["n_heads"])
    E = params["wq"].shape[0] // H
    D = params["wv"].shape[0] // H
    f32 = jnp.float32
    cdt = jnp.bfloat16 if USE_BF16_MXU else f32

    # Lane-dense key/window axis (padded key columns are masked before softmax).
    S_pad = max(128, ((S + 127) // 128) * 128)
    keys_p = jnp.pad(keys.astype(f32), ((0, 0), (0, S_pad - S), (0, 0))).astype(cdt)
    values_p = jnp.pad(values.astype(f32), ((0, 0), (0, S_pad - S), (0, 0))).astype(cdt)

    # Full-width weight layouts (head h = contiguous output-column block h*E:(h+1)*E).
    wq_t = params["wq"].T.astype(cdt)                    # (d_model, H*E)
    wk_t = params["wk"].T.astype(cdt)                    # (d_model, H*E)
    wv_t = params["wv"].T.astype(cdt)                    # (d_model, H*D)
    wo_t = params["wo"].T.astype(cdt)                    # (H*D, d_model)
    ws_hm = params["ws"].reshape(H, 1, d_model).astype(f32)
    bq = params["bq"].reshape(1, H * E).astype(f32)
    bk = params["bk"].reshape(1, H * E).astype(f32)
    bv = params["bv"].reshape(1, H * D).astype(f32)
    bs_hm = params["bs"].reshape(H, 1, 1).astype(f32)
    bo = params["bo"].reshape(1, d_model).astype(f32)

    # Squared |i-j| distance table and additive mask for padded key columns.
    ii = jnp.arange(L, dtype=f32)[:, None]
    jj = jnp.arange(S_pad, dtype=f32)[None, :]
    dist2 = (ii - jj) ** 2                                               # (L, S_pad)
    mask_add = jnp.where(jnp.arange(S_pad)[None, :] < S, 0.0, -1e30).astype(f32)

    def const_block(arr):
        nd = arr.ndim
        return pl.BlockSpec(arr.shape, lambda b, _nd=nd: (0,) * _nd)

    grid_spec = pltpu.PrefetchScalarGridSpec(
        num_scalar_prefetch=0,
        grid=(B,),
        in_specs=[
            pl.BlockSpec((1, L, d_model), lambda b: (b, 0, 0)),          # queries / x (f32)
            pl.BlockSpec((1, S_pad, d_model), lambda b: (b, 0, 0)),      # keys (padded)
            pl.BlockSpec((1, S_pad, d_model), lambda b: (b, 0, 0)),      # values (padded)
            const_block(wq_t), const_block(bq),                          # resident weights
            const_block(wk_t), const_block(bk),
            const_block(wv_t), const_block(bv),
            const_block(ws_hm), const_block(bs_hm),
            const_block(wo_t), const_block(bo),
            const_block(dist2), const_block(mask_add),
        ],
        out_specs=[
            pl.BlockSpec((1, L, d_model), lambda b: (b, 0, 0)),          # out
            pl.BlockSpec((1, H, L, S_pad), lambda b: (b, 0, 0, 0)),      # series
            pl.BlockSpec((1, H, L, S_pad), lambda b: (b, 0, 0, 0)),      # prior
            pl.BlockSpec((1, H, L, 1), lambda b: (b, 0, 0, 0)),          # sigma (per-row)
        ],
    )

    out_shapes = (
        jax.ShapeDtypeStruct((B, L, d_model), f32),
        jax.ShapeDtypeStruct((B, H, L, S_pad), f32),
        jax.ShapeDtypeStruct((B, H, L, S_pad), f32),
        jax.ShapeDtypeStruct((B, H, L, 1), f32),
    )

    kernel = _make_kernel(H, E, D, cdt)

    out, series, prior, sigma_col = pl.pallas_call(
        kernel,
        out_shape=out_shapes,
        grid_spec=grid_spec,
        compiler_params=pltpu.CompilerParams(
            dimension_semantics=("parallel",),
            vmem_limit_bytes=32 * 1024 * 1024,
        ),
    )(queries.astype(f32), keys_p, values_p,
      wq_t, bq, wk_t, bk, wv_t, bv, ws_hm, bs_hm, wo_t, bo, dist2, mask_add)

    # Strip lane padding; broadcast sigma to the module's (B, H, L, S) shape.
    sigma = jnp.broadcast_to(sigma_col, (B, H, L, S))
    return out, series[..., :S], prior[..., :S], sigma


def _init_linear(key, in_dim, out_dim):
    """Deterministic PyTorch-style Linear init: U(-1/sqrt(in), 1/sqrt(in))."""
    kw, kb = jax.random.split(key)
    bound = 1.0 / math.sqrt(in_dim)
    w = jax.random.uniform(kw, (out_dim, in_dim), jnp.float32, -bound, bound)
    b = jax.random.uniform(kb, (out_dim,), jnp.float32, -bound, bound)
    return w, b


def _reference(params, x, keys, values):
    """Pure-JAX f32 reference for validation."""
    B, L, d_model = x.shape
    S = keys.shape[1]
    H = params["n_heads"]
    E = params["wq"].shape[0] // H
    D = params["wv"].shape[0] // H
    q = (x @ params["wq"].T + params["bq"]).reshape(B, L, H, E)
    k = (keys @ params["wk"].T + params["bk"]).reshape(B, S, H, E)
    v = (values @ params["wv"].T + params["bv"]).reshape(B, S, H, D)
    sig = (x @ params["ws"].T + params["bs"]).reshape(B, L, H)
    scores = jnp.einsum("blhe,bshe->bhls", q, k) * (1.0 / math.sqrt(E))
    series = jax.nn.softmax(scores, axis=-1)
    sigma = jnp.transpose(sig, (0, 2, 1))
    sigma = jax.nn.sigmoid(sigma * 5.0) + 1e-5
    sigma = jnp.power(3.0, sigma) - 1.0
    sigma = jnp.broadcast_to(sigma[..., None], (B, H, L, S))
    ii = jnp.arange(L, dtype=jnp.float32)[:, None]
    jj = jnp.arange(S, dtype=jnp.float32)[None, :]
    dist = jnp.abs(ii - jj)
    prior = (1.0 / (math.sqrt(2 * math.pi) * sigma)) * jnp.exp(-dist[None, None] ** 2 / (2.0 * sigma ** 2))
    outv = jnp.einsum("bhls,bshd->blhd", series, v).reshape(B, L, H * D)
    out = outv @ params["wo"].T + params["bo"]
    return out, series, prior, sigma


if __name__ == "__main__":
    # Small shapes consistent with the module: B=2, L=S=8 (win_size), d_model=32, H=4.
    B, L, S, d_model, H = 2, 8, 8, 32, 4
    d_keys = d_model // H
    d_values = d_model // H

    root = jax.random.PRNGKey(0)
    kq, kk, kv, ks, ko, kx, kky, kvv = jax.random.split(root, 8)
    wq, bq = _init_linear(kq, d_model, d_keys * H)
    wk, bk = _init_linear(kk, d_model, d_keys * H)
    wv, bv = _init_linear(kv, d_model, d_values * H)
    ws, bs = _init_linear(ks, d_model, H)
    wo, bo = _init_linear(ko, d_values * H, d_model)
    params = dict(n_heads=H, wq=wq, bq=bq, wk=wk, bk=bk, wv=wv, bv=bv,
                  ws=ws, bs=bs, wo=wo, bo=bo)

    queries = jax.random.normal(kx, (B, L, d_model), jnp.float32)
    keys = jax.random.normal(kky, (B, S, d_model), jnp.float32)
    values = jax.random.normal(kvv, (B, S, d_model), jnp.float32)

    out, series, prior, sigma = attention_layer(params, queries, keys, values, attn_mask=None)
    jax.block_until_ready((out, series, prior, sigma))

    # Validate against the pure-JAX f32 reference.
    ref_out, ref_series, ref_prior, ref_sigma = _reference(params, queries, keys, values)
    assert out.shape == ref_out.shape and series.shape == ref_series.shape
    assert prior.shape == ref_prior.shape and sigma.shape == ref_sigma.shape
    # out/series go through bf16 MXU operands (f32 accumulation) -> loosened tolerances;
    # prior/sigma stay on an exact f32 path -> tight tolerances.
    o_tol = 7e-2 if USE_BF16_MXU else 3e-3
    s_tol = 3e-2 if USE_BF16_MXU else 3e-3
    assert jnp.allclose(out, ref_out, atol=o_tol, rtol=o_tol)
    assert jnp.allclose(series, ref_series, atol=s_tol, rtol=s_tol)
    assert jnp.allclose(prior, ref_prior, atol=1e-3, rtol=1e-3)
    assert jnp.allclose(sigma, ref_sigma, atol=1e-4, rtol=1e-4)

    print("KERNEL_OK")
</pallas_src>

<mosaic_0001>
module attributes {stable_mosaic.version = 11 : i64} {
  func.func @kernel(%arg0: i32, %arg1: memref<1x8x32xf32, #tpu.memory_space<vmem>>, %arg2: memref<1x128x32xbf16, #tpu.memory_space<vmem>>, %arg3: memref<1x128x32xbf16, #tpu.memory_space<vmem>>, %arg4: memref<32x32xbf16, #tpu.memory_space<vmem>>, %arg5: memref<1x32xf32, #tpu.memory_space<vmem>>, %arg6: memref<32x32xbf16, #tpu.memory_space<vmem>>, %arg7: memref<1x32xf32, #tpu.memory_space<vmem>>, %arg8: memref<32x32xbf16, #tpu.memory_space<vmem>>, %arg9: memref<1x32xf32, #tpu.memory_space<vmem>>, %arg10: memref<4x1x32xf32, #tpu.memory_space<vmem>>, %arg11: memref<4x1x1xf32, #tpu.memory_space<vmem>>, %arg12: memref<32x32xbf16, #tpu.memory_space<vmem>>, %arg13: memref<1x32xf32, #tpu.memory_space<vmem>>, %arg14: memref<8x128xf32, #tpu.memory_space<vmem>>, %arg15: memref<1x128xf32, #tpu.memory_space<vmem>>, %arg16: memref<1x8x32xf32, #tpu.memory_space<vmem>>, %arg17: memref<1x4x8x128xf32, #tpu.memory_space<vmem>>, %arg18: memref<1x4x8x128xf32, #tpu.memory_space<vmem>>, %arg19: memref<1x4x8x1xf32, #tpu.memory_space<vmem>>) attributes {dimension_semantics = [#tpu.dimension_semantics<parallel>], iteration_bounds = array<i64: 2>, scalar_prefetch = 0 : i64, scratch_operands = 0 : i64, tpu.core_type = #tpu.core_type<tc>, window_params = [{transform_indices = @transform_0, window_bounds = array<i64: 1, 8, 32>}, {transform_indices = @transform_1, window_bounds = array<i64: 1, 128, 32>}, {transform_indices = @transform_2, window_bounds = array<i64: 1, 128, 32>}, {pipeline_mode = #tpu.pipeline_mode<synchronous>, transform_indices = @transform_3, window_bounds = array<i64: 32, 32>}, {pipeline_mode = #tpu.pipeline_mode<synchronous>, transform_indices = @transform_4, window_bounds = array<i64: 1, 32>}, {pipeline_mode = #tpu.pipeline_mode<synchronous>, transform_indices = @transform_5, window_bounds = array<i64: 32, 32>}, {pipeline_mode = #tpu.pipeline_mode<synchronous>, transform_indices = @transform_6, window_bounds = array<i64: 1, 32>}, {pipeline_mode = #tpu.pipeline_mode<synchronous>, transform_indices = @transform_7, window_bounds = array<i64: 32, 32>}, {pipeline_mode = #tpu.pipeline_mode<synchronous>, transform_indices = @transform_8, window_bounds = array<i64: 1, 32>}, {pipeline_mode = #tpu.pipeline_mode<synchronous>, transform_indices = @transform_9, window_bounds = array<i64: 4, 1, 32>}, {pipeline_mode = #tpu.pipeline_mode<synchronous>, transform_indices = @transform_10, window_bounds = array<i64: 4, 1, 1>}, {pipeline_mode = #tpu.pipeline_mode<synchronous>, transform_indices = @transform_11, window_bounds = array<i64: 32, 32>}, {pipeline_mode = #tpu.pipeline_mode<synchronous>, transform_indices = @transform_12, window_bounds = array<i64: 1, 32>}, {pipeline_mode = #tpu.pipeline_mode<synchronous>, transform_indices = @transform_13, window_bounds = array<i64: 8, 128>}, {pipeline_mode = #tpu.pipeline_mode<synchronous>, transform_indices = @transform_14, window_bounds = array<i64: 1, 128>}, {transform_indices = @transform_15, window_bounds = array<i64: 1, 8, 32>}, {transform_indices = @transform_16, window_bounds = array<i64: 1, 4, 8, 128>}, {transform_indices = @transform_17, window_bounds = array<i64: 1, 4, 8, 128>}, {transform_indices = @transform_18, window_bounds = array<i64: 1, 4, 8, 1>}]} {
    %c0 = arith.constant 0 : index
    %c0_0 = arith.constant 0 : index
    %c0_1 = arith.constant 0 : index
    %0 = vector.load %arg1[%c0, %c0_0, %c0_1] : memref<1x8x32xf32, #tpu.memory_space<vmem>>, vector<1x8x32xf32>
    %1 = vector.shape_cast %0 : vector<1x8x32xf32> to vector<8x32xf32>
    %c0_2 = arith.constant 0 : index
    %c0_3 = arith.constant 0 : index
    %c0_4 = arith.constant 0 : index
    %2 = vector.load %arg2[%c0_2, %c0_3, %c0_4] : memref<1x128x32xbf16, #tpu.memory_space<vmem>>, vector<1x128x32xbf16>
    %3 = vector.shape_cast %2 : vector<1x128x32xbf16> to vector<128x32xbf16>
    %c0_5 = arith.constant 0 : index
    %c0_6 = arith.constant 0 : index
    %c0_7 = arith.constant 0 : index
    %4 = vector.load %arg3[%c0_5, %c0_6, %c0_7] : memref<1x128x32xbf16, #tpu.memory_space<vmem>>, vector<1x128x32xbf16>
    %5 = vector.shape_cast %4 : vector<1x128x32xbf16> to vector<128x32xbf16>
    %6 = arith.truncf %1 : vector<8x32xf32> to vector<8x32xbf16>
    %c0_8 = arith.constant 0 : index
    %c0_9 = arith.constant 0 : index
    %7 = vector.load %arg4[%c0_8, %c0_9] : memref<32x32xbf16, #tpu.memory_space<vmem>>, vector<32x32xbf16>
    %cst = arith.constant dense<0.000000e+00> : vector<8x32xf32>
    %8 = tpu.matmul %6, %7, %cst {dimension_numbers = #tpu.dot_dimension_numbers<[1], [0], [0], [1], [0, 0, 1, 1], [], []>} : vector<8x32xbf16>, vector<32x32xbf16>, vector<8x32xf32> -> vector<8x32xf32>
    %c0_10 = arith.constant 0 : index
    %c0_11 = arith.constant 0 : index
    %9 = vector.load %arg5[%c0_10, %c0_11] : memref<1x32xf32, #tpu.memory_space<vmem>>, vector<1x32xf32>
    %10 = vector.broadcast %9 : vector<1x32xf32> to vector<8x32xf32>
    %11 = arith.addf %8, %10 : vector<8x32xf32>
    %c0_12 = arith.constant 0 : index
    %c0_13 = arith.constant 0 : index
    %12 = vector.load %arg6[%c0_12, %c0_13] : memref<32x32xbf16, #tpu.memory_space<vmem>>, vector<32x32xbf16>
    %cst_14 = arith.constant dense<0.000000e+00> : vector<128x32xf32>
    %13 = tpu.matmul %3, %12, %cst_14 {dimension_numbers = #tpu.dot_dimension_numbers<[1], [0], [0], [1], [0, 0, 1, 1], [], []>} : vector<128x32xbf16>, vector<32x32xbf16>, vector<128x32xf32> -> vector<128x32xf32>
    %c0_15 = arith.constant 0 : index
    %c0_16 = arith.constant 0 : index
    %14 = vector.load %arg7[%c0_15, %c0_16] : memref<1x32xf32, #tpu.memory_space<vmem>>, vector<1x32xf32>
    %15 = vector.broadcast %14 : vector<1x32xf32> to vector<128x32xf32>
    %16 = arith.addf %13, %15 : vector<128x32xf32>
    %c0_17 = arith.constant 0 : index
    %c0_18 = arith.constant 0 : index
    %17 = vector.load %arg8[%c0_17, %c0_18] : memref<32x32xbf16, #tpu.memory_space<vmem>>, vector<32x32xbf16>
    %cst_19 = arith.constant dense<0.000000e+00> : vector<128x32xf32>
    %18 = tpu.matmul %5, %17, %cst_19 {dimension_numbers = #tpu.dot_dimension_numbers<[1], [0], [0], [1], [0, 0, 1, 1], [], []>} : vector<128x32xbf16>, vector<32x32xbf16>, vector<128x32xf32> -> vector<128x32xf32>
    %c0_20 = arith.constant 0 : index
    %c0_21 = arith.constant 0 : index
    %19 = vector.load %arg9[%c0_20, %c0_21] : memref<1x32xf32, #tpu.memory_space<vmem>>, vector<1x32xf32>
    %20 = vector.broadcast %19 : vector<1x32xf32> to vector<128x32xf32>
    %21 = arith.addf %18, %20 : vector<128x32xf32>
    %22 = vector.extract_strided_slice %11 {offsets = [0, 0], sizes = [8, 8], strides = [1, 1]} : vector<8x32xf32> to vector<8x8xf32>
    %23 = arith.truncf %22 : vector<8x8xf32> to vector<8x8xbf16>
    %24 = vector.extract_strided_slice %16 {offsets = [0, 0], sizes = [128, 8], strides = [1, 1]} : vector<128x32xf32> to vector<128x8xf32>
    %25 = arith.truncf %24 : vector<128x8xf32> to vector<128x8xbf16>
    %26 = vector.extract_strided_slice %21 {offsets = [0, 0], sizes = [128, 8], strides = [1, 1]} : vector<128x32xf32> to vector<128x8xf32>
    %27 = arith.truncf %26 : vector<128x8xf32> to vector<128x8xbf16>
    %cst_22 = arith.constant dense<0.000000e+00> : vector<8x128xf32>
    %28 = tpu.matmul %23, %25, %cst_22 {dimension_numbers = #tpu.dot_dimension_numbers<[1], [1], [0], [0], [0, 0, 1, 0], [], []>} : vector<8x8xbf16>, vector<128x8xbf16>, vector<8x128xf32> -> vector<8x128xf32>
    %cst_23 = arith.constant 0.353553385 : f32
    %29 = vector.broadcast %cst_23 : f32 to vector<8x128xf32>
    %30 = arith.mulf %28, %29 : vector<8x128xf32>
    %c0_24 = arith.constant 0 : index
    %c0_25 = arith.constant 0 : index
    %31 = vector.load %arg15[%c0_24, %c0_25] : memref<1x128xf32, #tpu.memory_space<vmem>>, vector<1x128xf32>
    %32 = vector.broadcast %31 : vector<1x128xf32> to vector<8x128xf32>
    %33 = arith.addf %30, %32 : vector<8x128xf32>
    %cst_26 = arith.constant dense<0xFF800000> : vector<8xf32>
    %34 = vector.multi_reduction <maximumf>, %33, %cst_26 [1] : vector<8x128xf32> to vector<8xf32>
    %35 = vector.shape_cast %34 : vector<8xf32> to vector<8x1xf32>
    %36 = vector.broadcast %35 : vector<8x1xf32> to vector<8x128xf32>
    %37 = arith.subf %33, %36 : vector<8x128xf32>
    %38 = math.exp %37 : vector<8x128xf32>
    %cst_27 = arith.constant dense<0.000000e+00> : vector<8xf32>
    %39 = vector.multi_reduction <add>, %38, %cst_27 [1] : vector<8x128xf32> to vector<8xf32>
    %40 = vector.shape_cast %39 : vector<8xf32> to vector<8x1xf32>
    %41 = tpu.reciprocal %40 {approx = true} : vector<8x1xf32> -> vector<8x1xf32>
    %42 = vector.broadcast %41 : vector<8x1xf32> to vector<8x128xf32>
    %43 = arith.mulf %38, %42 : vector<8x128xf32>
    %c0_28 = arith.constant 0 : index
    %c0_29 = arith.constant 0 : index
    %c0_30 = arith.constant 0 : index
    %44 = vector.load %arg10[%c0_28, %c0_29, %c0_30] : memref<4x1x32xf32, #tpu.memory_space<vmem>>, vector<1x1x32xf32>
    %45 = vector.shape_cast %44 : vector<1x1x32xf32> to vector<1x32xf32>
    %46 = vector.broadcast %45 : vector<1x32xf32> to vector<8x32xf32>
    %47 = arith.mulf %1, %46 : vector<8x32xf32>
    %cst_31 = arith.constant dense<0.000000e+00> : vector<8xf32>
    %48 = vector.multi_reduction <add>, %47, %cst_31 [1] : vector<8x32xf32> to vector<8xf32>
    %49 = vector.shape_cast %48 : vector<8xf32> to vector<8x1xf32>
    %c0_32 = arith.constant 0 : index
    %c0_33 = arith.constant 0 : index
    %c0_34 = arith.constant 0 : index
    %50 = vector.load %arg11[%c0_32, %c0_33, %c0_34] : memref<4x1x1xf32, #tpu.memory_space<vmem>>, vector<1x1x1xf32>
    %51 = vector.shape_cast %50 : vector<1x1x1xf32> to vector<1x1xf32>
    %52 = vector.broadcast %51 : vector<1x1xf32> to vector<8x1xf32>
    %53 = arith.addf %49, %52 : vector<8x1xf32>
    %cst_35 = arith.constant 5.000000e+00 : f32
    %54 = vector.broadcast %cst_35 : f32 to vector<8x1xf32>
    %55 = arith.mulf %53, %54 : vector<8x1xf32>
    %56 = arith.negf %55 : vector<8x1xf32>
    %57 = math.exp %56 : vector<8x1xf32>
    %cst_36 = arith.constant 1.000000e+00 : f32
    %58 = vector.broadcast %cst_36 : f32 to vector<8x1xf32>
    %59 = arith.addf %58, %57 : vector<8x1xf32>
    %60 = arith.divf %58, %59 : vector<8x1xf32>
    %cst_37 = arith.constant 9.99999974E-6 : f32
    %61 = vector.broadcast %cst_37 : f32 to vector<8x1xf32>
    %62 = arith.addf %60, %61 : vector<8x1xf32>
    %cst_38 = arith.constant 1.09861231 : f32
    %63 = vector.broadcast %cst_38 : f32 to vector<8x1xf32>
    %64 = arith.mulf %62, %63 : vector<8x1xf32>
    %65 = math.exp %64 : vector<8x1xf32>
    %cst_39 = arith.constant 1.000000e+00 : f32
    %66 = vector.broadcast %cst_39 : f32 to vector<8x1xf32>
    %67 = arith.subf %65, %66 : vector<8x1xf32>
    %68 = tpu.reciprocal %67 : vector<8x1xf32> -> vector<8x1xf32>
    %cst_40 = arith.constant 0.398942292 : f32
    %69 = vector.broadcast %cst_40 : f32 to vector<8x1xf32>
    %70 = arith.mulf %69, %68 : vector<8x1xf32>
    %cst_41 = arith.constant -5.000000e-01 : f32
    %71 = vector.broadcast %cst_41 : f32 to vector<8x1xf32>
    %72 = arith.mulf %71, %68 : vector<8x1xf32>
    %73 = arith.mulf %72, %68 : vector<8x1xf32>
    %c0_42 = arith.constant 0 : index
    %c0_43 = arith.constant 0 : index
    %74 = vector.load %arg14[%c0_42, %c0_43] : memref<8x128xf32, #tpu.memory_space<vmem>>, vector<8x128xf32>
    %75 = vector.broadcast %73 : vector<8x1xf32> to vector<8x128xf32>
    %76 = arith.mulf %74, %75 : vector<8x128xf32>
    %77 = math.exp %76 : vector<8x128xf32>
    %78 = vector.broadcast %70 : vector<8x1xf32> to vector<8x128xf32>
    %79 = arith.mulf %78, %77 : vector<8x128xf32>
    %c0_44 = arith.constant 0 : index
    %c0_45 = arith.constant 0 : index
    %c0_46 = arith.constant 0 : index
    %c0_47 = arith.constant 0 : index
    %80 = vector.load %arg17[%c0_44, %c0_45, %c0_46, %c0_47] : memref<1x4x8x128xf32, #tpu.memory_space<vmem>>, vector<1x1x8x128xf32>
    %81 = vector.shape_cast %80 : vector<1x1x8x128xf32> to vector<8x128xf32>
    %82 = vector.shape_cast %43 : vector<8x128xf32> to vector<1x1x8x128xf32>
    tpu.vector_store %arg17[%c0_44, %c0_45, %c0_46, %c0_47], %82 {strides = array<i32>} : memref<1x4x8x128xf32, #tpu.memory_space<vmem>>, vector<1x1x8x128xf32>,
    %c0_48 = arith.constant 0 : index
    %c0_49 = arith.constant 0 : index
    %c0_50 = arith.constant 0 : index
    %c0_51 = arith.constant 0 : index
    %83 = vector.load %arg18[%c0_48, %c0_49, %c0_50, %c0_51] : memref<1x4x8x128xf32, #tpu.memory_space<vmem>>, vector<1x1x8x128xf32>
    %84 = vector.shape_cast %83 : vector<1x1x8x128xf32> to vector<8x128xf32>
    %85 = vector.shape_cast %79 : vector<8x128xf32> to vector<1x1x8x128xf32>
    tpu.vector_store %arg18[%c0_48, %c0_49, %c0_50, %c0_51], %85 {strides = array<i32>} : memref<1x4x8x128xf32, #tpu.memory_space<vmem>>, vector<1x1x8x128xf32>,
    %c0_52 = arith.constant 0 : index
    %c0_53 = arith.constant 0 : index
    %c0_54 = arith.constant 0 : index
    %c0_55 = arith.constant 0 : index
    %86 = vector.load %arg19[%c0_52, %c0_53, %c0_54, %c0_55] : memref<1x4x8x1xf32, #tpu.memory_space<vmem>>, vector<1x1x8x1xf32>
    %87 = vector.shape_cast %86 : vector<1x1x8x1xf32> to vector<8x1xf32>
    %88 = vector.shape_cast %67 : vector<8x1xf32> to vector<1x1x8x1xf32>
    tpu.vector_store %arg19[%c0_52, %c0_53, %c0_54, %c0_55], %88 {strides = array<i32>} : memref<1x4x8x1xf32, #tpu.memory_space<vmem>>, vector<1x1x8x1xf32>,
    %89 = arith.truncf %43 : vector<8x128xf32> to vector<8x128xbf16>
    %cst_56 = arith.constant dense<0.000000e+00> : vector<8x8xf32>
    %90 = tpu.matmul %89, %27, %cst_56 {dimension_numbers = #tpu.dot_dimension_numbers<[1], [0], [0], [1], [0, 0, 1, 1], [], []>} : vector<8x128xbf16>, vector<128x8xbf16>, vector<8x8xf32> -> vector<8x8xf32>
    %91 = vector.extract_strided_slice %11 {offsets = [0, 8], sizes = [8, 8], strides = [1, 1]} : vector<8x32xf32> to vector<8x8xf32>
    %92 = arith.truncf %91 : vector<8x8xf32> to vector<8x8xbf16>
    %93 = vector.extract_strided_slice %16 {offsets = [0, 8], sizes = [128, 8], strides = [1, 1]} : vector<128x32xf32> to vector<128x8xf32>
    %94 = arith.truncf %93 : vector<128x8xf32> to vector<128x8xbf16>
    %95 = vector.extract_strided_slice %21 {offsets = [0, 8], sizes = [128, 8], strides = [1, 1]} : vector<128x32xf32> to vector<128x8xf32>
    %96 = arith.truncf %95 : vector<128x8xf32> to vector<128x8xbf16>
    %cst_57 = arith.constant dense<0.000000e+00> : vector<8x128xf32>
    %97 = tpu.matmul %92, %94, %cst_57 {dimension_numbers = #tpu.dot_dimension_numbers<[1], [1], [0], [0], [0, 0, 1, 0], [], []>} : vector<8x8xbf16>, vector<128x8xbf16>, vector<8x128xf32> -> vector<8x128xf32>
    %cst_58 = arith.constant 0.353553385 : f32
    %98 = vector.broadcast %cst_58 : f32 to vector<8x128xf32>
    %99 = arith.mulf %97, %98 : vector<8x128xf32>
    %c0_59 = arith.constant 0 : index
    %c0_60 = arith.constant 0 : index
    %100 = vector.load %arg15[%c0_59, %c0_60] : memref<1x128xf32, #tpu.memory_space<vmem>>, vector<1x128xf32>
    %101 = vector.broadcast %100 : vector<1x128xf32> to vector<8x128xf32>
    %102 = arith.addf %99, %101 : vector<8x128xf32>
    %cst_61 = arith.constant dense<0xFF800000> : vector<8xf32>
    %103 = vector.multi_reduction <maximumf>, %102, %cst_61 [1] : vector<8x128xf32> to vector<8xf32>
    %104 = vector.shape_cast %103 : vector<8xf32> to vector<8x1xf32>
    %105 = vector.broadcast %104 : vector<8x1xf32> to vector<8x128xf32>
    %106 = arith.subf %102, %105 : vector<8x128xf32>
    %107 = math.exp %106 : vector<8x128xf32>
    %cst_62 = arith.constant dense<0.000000e+00> : vector<8xf32>
    %108 = vector.multi_reduction <add>, %107, %cst_62 [1] : vector<8x128xf32> to vector<8xf32>
    %109 = vector.shape_cast %108 : vector<8xf32> to vector<8x1xf32>
    %110 = tpu.reciprocal %109 {approx = true} : vector<8x1xf32> -> vector<8x1xf32>
    %111 = vector.broadcast %110 : vector<8x1xf32> to vector<8x128xf32>
    %112 = arith.mulf %107, %111 : vector<8x128xf32>
    %c1 = arith.constant 1 : index
    %c0_63 = arith.constant 0 : index
    %c0_64 = arith.constant 0 : index
    %113 = vector.load %arg10[%c1, %c0_63, %c0_64] : memref<4x1x32xf32, #tpu.memory_space<vmem>>, vector<1x1x32xf32>
    %114 = vector.shape_cast %113 : vector<1x1x32xf32> to vector<1x32xf32>
    %115 = vector.broadcast %114 : vector<1x32xf32> to vector<8x32xf32>
    %116 = arith.mulf %1, %115 : vector<8x32xf32>
    %cst_65 = arith.constant dense<0.000000e+00> : vector<8xf32>
    %117 = vector.multi_reduction <add>, %116, %cst_65 [1] : vector<8x32xf32> to vector<8xf32>
    %118 = vector.shape_cast %117 : vector<8xf32> to vector<8x1xf32>
    %c1_66 = arith.constant 1 : index
    %c0_67 = arith.constant 0 : index
    %c0_68 = arith.constant 0 : index
    %119 = vector.load %arg11[%c1_66, %c0_67, %c0_68] : memref<4x1x1xf32, #tpu.memory_space<vmem>>, vector<1x1x1xf32>
    %120 = vector.shape_cast %119 : vector<1x1x1xf32> to vector<1x1xf32>
    %121 = vector.broadcast %120 : vector<1x1xf32> to vector<8x1xf32>
    %122 = arith.addf %118, %121 : vector<8x1xf32>
    %cst_69 = arith.constant 5.000000e+00 : f32
    %123 = vector.broadcast %cst_69 : f32 to vector<8x1xf32>
    %124 = arith.mulf %122, %123 : vector<8x1xf32>
    %125 = arith.negf %124 : vector<8x1xf32>
    %126 = math.exp %125 : vector<8x1xf32>
    %cst_70 = arith.constant 1.000000e+00 : f32
    %127 = vector.broadcast %cst_70 : f32 to vector<8x1xf32>
    %128 = arith.addf %127, %126 : vector<8x1xf32>
    %129 = arith.divf %127, %128 : vector<8x1xf32>
    %cst_71 = arith.constant 9.99999974E-6 : f32
    %130 = vector.broadcast %cst_71 : f32 to vector<8x1xf32>
    %131 = arith.addf %129, %130 : vector<8x1xf32>
    %cst_72 = arith.constant 1.09861231 : f32
    %132 = vector.broadcast %cst_72 : f32 to vector<8x1xf32>
    %133 = arith.mulf %131, %132 : vector<8x1xf32>
    %134 = math.exp %133 : vector<8x1xf32>
    %cst_73 = arith.constant 1.000000e+00 : f32
    %135 = vector.broadcast %cst_73 : f32 to vector<8x1xf32>
    %136 = arith.subf %134, %135 : vector<8x1xf32>
    %137 = tpu.reciprocal %136 : vector<8x1xf32> -> vector<8x1xf32>
    %cst_74 = arith.constant 0.398942292 : f32
    %138 = vector.broadcast %cst_74 : f32 to vector<8x1xf32>
    %139 = arith.mulf %138, %137 : vector<8x1xf32>
    %cst_75 = arith.constant -5.000000e-01 : f32
    %140 = vector.broadcast %cst_75 : f32 to vector<8x1xf32>
    %141 = arith.mulf %140, %137 : vector<8x1xf32>
    %142 = arith.mulf %141, %137 : vector<8x1xf32>
    %c0_76 = arith.constant 0 : index
    %c0_77 = arith.constant 0 : index
    %143 = vector.load %arg14[%c0_76, %c0_77] : memref<8x128xf32, #tpu.memory_space<vmem>>, vector<8x128xf32>
    %144 = vector.broadcast %142 : vector<8x1xf32> to vector<8x128xf32>
    %145 = arith.mulf %143, %144 : vector<8x128xf32>
    %146 = math.exp %145 : vector<8x128xf32>
    %147 = vector.broadcast %139 : vector<8x1xf32> to vector<8x128xf32>
    %148 = arith.mulf %147, %146 : vector<8x128xf32>
    %c0_78 = arith.constant 0 : index
    %c1_79 = arith.constant 1 : index
    %c0_80 = arith.constant 0 : index
    %c0_81 = arith.constant 0 : index
    %149 = vector.load %arg17[%c0_78, %c1_79, %c0_80, %c0_81] : memref<1x4x8x128xf32, #tpu.memory_space<vmem>>, vector<1x1x8x128xf32>
    %150 = vector.shape_cast %149 : vector<1x1x8x128xf32> to vector<8x128xf32>
    %151 = vector.shape_cast %112 : vector<8x128xf32> to vector<1x1x8x128xf32>
    tpu.vector_store %arg17[%c0_78, %c1_79, %c0_80, %c0_81], %151 {strides = array<i32>} : memref<1x4x8x128xf32, #tpu.memory_space<vmem>>, vector<1x1x8x128xf32>,
    %c0_82 = arith.constant 0 : index
    %c1_83 = arith.constant 1 : index
    %c0_84 = arith.constant 0 : index
    %c0_85 = arith.constant 0 : index
    %152 = vector.load %arg18[%c0_82, %c1_83, %c0_84, %c0_85] : memref<1x4x8x128xf32, #tpu.memory_space<vmem>>, vector<1x1x8x128xf32>
    %153 = vector.shape_cast %152 : vector<1x1x8x128xf32> to vector<8x128xf32>
    %154 = vector.shape_cast %148 : vector<8x128xf32> to vector<1x1x8x128xf32>
    tpu.vector_store %arg18[%c0_82, %c1_83, %c0_84, %c0_85], %154 {strides = array<i32>} : memref<1x4x8x128xf32, #tpu.memory_space<vmem>>, vector<1x1x8x128xf32>,
    %c0_86 = arith.constant 0 : index
    %c1_87 = arith.constant 1 : index
    %c0_88 = arith.constant 0 : index
    %c0_89 = arith.constant 0 : index
    %155 = vector.load %arg19[%c0_86, %c1_87, %c0_88, %c0_89] : memref<1x4x8x1xf32, #tpu.memory_space<vmem>>, vector<1x1x8x1xf32>
    %156 = vector.shape_cast %155 : vector<1x1x8x1xf32> to vector<8x1xf32>
    %157 = vector.shape_cast %136 : vector<8x1xf32> to vector<1x1x8x1xf32>
    tpu.vector_store %arg19[%c0_86, %c1_87, %c0_88, %c0_89], %157 {strides = array<i32>} : memref<1x4x8x1xf32, #tpu.memory_space<vmem>>, vector<1x1x8x1xf32>,
    %158 = arith.truncf %112 : vector<8x128xf32> to vector<8x128xbf16>
    %cst_90 = arith.constant dense<0.000000e+00> : vector<8x8xf32>
    %159 = tpu.matmul %158, %96, %cst_90 {dimension_numbers = #tpu.dot_dimension_numbers<[1], [0], [0], [1], [0, 0, 1, 1], [], []>} : vector<8x128xbf16>, vector<128x8xbf16>, vector<8x8xf32> -> vector<8x8xf32>
    %160 = vector.extract_strided_slice %11 {offsets = [0, 16], sizes = [8, 8], strides = [1, 1]} : vector<8x32xf32> to vector<8x8xf32>
    %161 = arith.truncf %160 : vector<8x8xf32> to vector<8x8xbf16>
    %162 = vector.extract_strided_slice %16 {offsets = [0, 16], sizes = [128, 8], strides = [1, 1]} : vector<128x32xf32> to vector<128x8xf32>
    %163 = arith.truncf %162 : vector<128x8xf32> to vector<128x8xbf16>
    %164 = vector.extract_strided_slice %21 {offsets = [0, 16], sizes = [128, 8], strides = [1, 1]} : vector<128x32xf32> to vector<128x8xf32>
    %165 = arith.truncf %164 : vector<128x8xf32> to vector<128x8xbf16>
    %cst_91 = arith.constant dense<0.000000e+00> : vector<8x128xf32>
    %166 = tpu.matmul %161, %163, %cst_91 {dimension_numbers = #tpu.dot_dimension_numbers<[1], [1], [0], [0], [0, 0, 1, 0], [], []>} : vector<8x8xbf16>, vector<128x8xbf16>, vector<8x128xf32> -> vector<8x128xf32>
    %cst_92 = arith.constant 0.353553385 : f32
    %167 = vector.broadcast %cst_92 : f32 to vector<8x128xf32>
    %168 = arith.mulf %166, %167 : vector<8x128xf32>
    %c0_93 = arith.constant 0 : index
    %c0_94 = arith.constant 0 : index
    %169 = vector.load %arg15[%c0_93, %c0_94] : memref<1x128xf32, #tpu.memory_space<vmem>>, vector<1x128xf32>
    %170 = vector.broadcast %169 : vector<1x128xf32> to vector<8x128xf32>
    %171 = arith.addf %168, %170 : vector<8x128xf32>
    %cst_95 = arith.constant dense<0xFF800000> : vector<8xf32>
    %172 = vector.multi_reduction <maximumf>, %171, %cst_95 [1] : vector<8x128xf32> to vector<8xf32>
    %173 = vector.shape_cast %172 : vector<8xf32> to vector<8x1xf32>
    %174 = vector.broadcast %173 : vector<8x1xf32> to vector<8x128xf32>
    %175 = arith.subf %171, %174 : vector<8x128xf32>
    %176 = math.exp %175 : vector<8x128xf32>
    %cst_96 = arith.constant dense<0.000000e+00> : vector<8xf32>
    %177 = vector.multi_reduction <add>, %176, %cst_96 [1] : vector<8x128xf32> to vector<8xf32>
    %178 = vector.shape_cast %177 : vector<8xf32> to vector<8x1xf32>
    %179 = tpu.reciprocal %178 {approx = true} : vector<8x1xf32> -> vector<8x1xf32>
    %180 = vector.broadcast %179 : vector<8x1xf32> to vector<8x128xf32>
    %181 = arith.mulf %176, %180 : vector<8x128xf32>
    %c2 = arith.constant 2 : index
    %c0_97 = arith.constant 0 : index
    %c0_98 = arith.constant 0 : index
    %182 = vector.load %arg10[%c2, %c0_97, %c0_98] : memref<4x1x32xf32, #tpu.memory_space<vmem>>, vector<1x1x32xf32>
    %183 = vector.shape_cast %182 : vector<1x1x32xf32> to vector<1x32xf32>
    %184 = vector.broadcast %183 : vector<1x32xf32> to vector<8x32xf32>
    %185 = arith.mulf %1, %184 : vector<8x32xf32>
    %cst_99 = arith.constant dense<0.000000e+00> : vector<8xf32>
    %186 = vector.multi_reduction <add>, %185, %cst_99 [1] : vector<8x32xf32> to vector<8xf32>
    %187 = vector.shape_cast %186 : vector<8xf32> to vector<8x1xf32>
    %c2_100 = arith.constant 2 : index
    %c0_101 = arith.constant 0 : index
    %c0_102 = arith.constant 0 : index
    %188 = vector.load %arg11[%c2_100, %c0_101, %c0_102] : memref<4x1x1xf32, #tpu.memory_space<vmem>>, vector<1x1x1xf32>
    %189 = vector.shape_cast %188 : vector<1x1x1xf32> to vector<1x1xf32>
    %190 = vector.broadcast %189 : vector<1x1xf32> to vector<8x1xf32>
    %191 = arith.addf %187, %190 : vector<8x1xf32>
    %cst_103 = arith.constant 5.000000e+00 : f32
    %192 = vector.broadcast %cst_103 : f32 to vector<8x1xf32>
    %193 = arith.mulf %191, %192 : vector<8x1xf32>
    %194 = arith.negf %193 : vector<8x1xf32>
    %195 = math.exp %194 : vector<8x1xf32>
    %cst_104 = arith.constant 1.000000e+00 : f32
    %196 = vector.broadcast %cst_104 : f32 to vector<8x1xf32>
    %197 = arith.addf %196, %195 : vector<8x1xf32>
    %198 = arith.divf %196, %197 : vector<8x1xf32>
    %cst_105 = arith.constant 9.99999974E-6 : f32
    %199 = vector.broadcast %cst_105 : f32 to vector<8x1xf32>
    %200 = arith.addf %198, %199 : vector<8x1xf32>
    %cst_106 = arith.constant 1.09861231 : f32
    %201 = vector.broadcast %cst_106 : f32 to vector<8x1xf32>
    %202 = arith.mulf %200, %201 : vector<8x1xf32>
    %203 = math.exp %202 : vector<8x1xf32>
    %cst_107 = arith.constant 1.000000e+00 : f32
    %204 = vector.broadcast %cst_107 : f32 to vector<8x1xf32>
    %205 = arith.subf %203, %204 : vector<8x1xf32>
    %206 = tpu.reciprocal %205 : vector<8x1xf32> -> vector<8x1xf32>
    %cst_108 = arith.constant 0.398942292 : f32
    %207 = vector.broadcast %cst_108 : f32 to vector<8x1xf32>
    %208 = arith.mulf %207, %206 : vector<8x1xf32>
    %cst_109 = arith.constant -5.000000e-01 : f32
    %209 = vector.broadcast %cst_109 : f32 to vector<8x1xf32>
    %210 = arith.mulf %209, %206 : vector<8x1xf32>
    %211 = arith.mulf %210, %206 : vector<8x1xf32>
    %c0_110 = arith.constant 0 : index
    %c0_111 = arith.constant 0 : index
    %212 = vector.load %arg14[%c0_110, %c0_111] : memref<8x128xf32, #tpu.memory_space<vmem>>, vector<8x128xf32>
    %213 = vector.broadcast %211 : vector<8x1xf32> to vector<8x128xf32>
    %214 = arith.mulf %212, %213 : vector<8x128xf32>
    %215 = math.exp %214 : vector<8x128xf32>
    %216 = vector.broadcast %208 : vector<8x1xf32> to vector<8x128xf32>
    %217 = arith.mulf %216, %215 : vector<8x128xf32>
    %c0_112 = arith.constant 0 : index
    %c2_113 = arith.constant 2 : index
    %c0_114 = arith.constant 0 : index
    %c0_115 = arith.constant 0 : index
    %218 = vector.load %arg17[%c0_112, %c2_113, %c0_114, %c0_115] : memref<1x4x8x128xf32, #tpu.memory_space<vmem>>, vector<1x1x8x128xf32>
    %219 = vector.shape_cast %218 : vector<1x1x8x128xf32> to vector<8x128xf32>
    %220 = vector.shape_cast %181 : vector<8x128xf32> to vector<1x1x8x128xf32>
    tpu.vector_store %arg17[%c0_112, %c2_113, %c0_114, %c0_115], %220 {strides = array<i32>} : memref<1x4x8x128xf32, #tpu.memory_space<vmem>>, vector<1x1x8x128xf32>,
    %c0_116 = arith.constant 0 : index
    %c2_117 = arith.constant 2 : index
    %c0_118 = arith.constant 0 : index
    %c0_119 = arith.constant 0 : index
    %221 = vector.load %arg18[%c0_116, %c2_117, %c0_118, %c0_119] : memref<1x4x8x128xf32, #tpu.memory_space<vmem>>, vector<1x1x8x128xf32>
    %222 = vector.shape_cast %221 : vector<1x1x8x128xf32> to vector<8x128xf32>
    %223 = vector.shape_cast %217 : vector<8x128xf32> to vector<1x1x8x128xf32>
    tpu.vector_store %arg18[%c0_116, %c2_117, %c0_118, %c0_119], %223 {strides = array<i32>} : memref<1x4x8x128xf32, #tpu.memory_space<vmem>>, vector<1x1x8x128xf32>,
    %c0_120 = arith.constant 0 : index
    %c2_121 = arith.constant 2 : index
    %c0_122 = arith.constant 0 : index
    %c0_123 = arith.constant 0 : index
    %224 = vector.load %arg19[%c0_120, %c2_121, %c0_122, %c0_123] : memref<1x4x8x1xf32, #tpu.memory_space<vmem>>, vector<1x1x8x1xf32>
    %225 = vector.shape_cast %224 : vector<1x1x8x1xf32> to vector<8x1xf32>
    %226 = vector.shape_cast %205 : vector<8x1xf32> to vector<1x1x8x1xf32>
    tpu.vector_store %arg19[%c0_120, %c2_121, %c0_122, %c0_123], %226 {strides = array<i32>} : memref<1x4x8x1xf32, #tpu.memory_space<vmem>>, vector<1x1x8x1xf32>,
    %227 = arith.truncf %181 : vector<8x128xf32> to vector<8x128xbf16>
    %cst_124 = arith.constant dense<0.000000e+00> : vector<8x8xf32>
    %228 = tpu.matmul %227, %165, %cst_124 {dimension_numbers = #tpu.dot_dimension_numbers<[1], [0], [0], [1], [0, 0, 1, 1], [], []>} : vector<8x128xbf16>, vector<128x8xbf16>, vector<8x8xf32> -> vector<8x8xf32>
    %229 = vector.extract_strided_slice %11 {offsets = [0, 24], sizes = [8, 8], strides = [1, 1]} : vector<8x32xf32> to vector<8x8xf32>
    %230 = arith.truncf %229 : vector<8x8xf32> to vector<8x8xbf16>
    %231 = vector.extract_strided_slice %16 {offsets = [0, 24], sizes = [128, 8], strides = [1, 1]} : vector<128x32xf32> to vector<128x8xf32>
    %232 = arith.truncf %231 : vector<128x8xf32> to vector<128x8xbf16>
    %233 = vector.extract_strided_slice %21 {offsets = [0, 24], sizes = [128, 8], strides = [1, 1]} : vector<128x32xf32> to vector<128x8xf32>
    %234 = arith.truncf %233 : vector<128x8xf32> to vector<128x8xbf16>
    %cst_125 = arith.constant dense<0.000000e+00> : vector<8x128xf32>
    %235 = tpu.matmul %230, %232, %cst_125 {dimension_numbers = #tpu.dot_dimension_numbers<[1], [1], [0], [0], [0, 0, 1, 0], [], []>} : vector<8x8xbf16>, vector<128x8xbf16>, vector<8x128xf32> -> vector<8x128xf32>
    %cst_126 = arith.constant 0.353553385 : f32
    %236 = vector.broadcast %cst_126 : f32 to vector<8x128xf32>
    %237 = arith.mulf %235, %236 : vector<8x128xf32>
    %c0_127 = arith.constant 0 : index
    %c0_128 = arith.constant 0 : index
    %238 = vector.load %arg15[%c0_127, %c0_128] : memref<1x128xf32, #tpu.memory_space<vmem>>, vector<1x128xf32>
    %239 = vector.broadcast %238 : vector<1x128xf32> to vector<8x128xf32>
    %240 = arith.addf %237, %239 : vector<8x128xf32>
    %cst_129 = arith.constant dense<0xFF800000> : vector<8xf32>
    %241 = vector.multi_reduction <maximumf>, %240, %cst_129 [1] : vector<8x128xf32> to vector<8xf32>
    %242 = vector.shape_cast %241 : vector<8xf32> to vector<8x1xf32>
    %243 = vector.broadcast %242 : vector<8x1xf32> to vector<8x128xf32>
    %244 = arith.subf %240, %243 : vector<8x128xf32>
    %245 = math.exp %244 : vector<8x128xf32>
    %cst_130 = arith.constant dense<0.000000e+00> : vector<8xf32>
    %246 = vector.multi_reduction <add>, %245, %cst_130 [1] : vector<8x128xf32> to vector<8xf32>
    %247 = vector.shape_cast %246 : vector<8xf32> to vector<8x1xf32>
    %248 = tpu.reciprocal %247 {approx = true} : vector<8x1xf32> -> vector<8x1xf32>
    %249 = vector.broadcast %248 : vector<8x1xf32> to vector<8x128xf32>
    %250 = arith.mulf %245, %249 : vector<8x128xf32>
    %c3 = arith.constant 3 : index
    %c0_131 = arith.constant 0 : index
    %c0_132 = arith.constant 0 : index
    %251 = vector.load %arg10[%c3, %c0_131, %c0_132] : memref<4x1x32xf32, #tpu.memory_space<vmem>>, vector<1x1x32xf32>
    %252 = vector.shape_cast %251 : vector<1x1x32xf32> to vector<1x32xf32>
    %253 = vector.broadcast %252 : vector<1x32xf32> to vector<8x32xf32>
    %254 = arith.mulf %1, %253 : vector<8x32xf32>
    %cst_133 = arith.constant dense<0.000000e+00> : vector<8xf32>
    %255 = vector.multi_reduction <add>, %254, %cst_133 [1] : vector<8x32xf32> to vector<8xf32>
    %256 = vector.shape_cast %255 : vector<8xf32> to vector<8x1xf32>
    %c3_134 = arith.constant 3 : index
    %c0_135 = arith.constant 0 : index
    %c0_136 = arith.constant 0 : index
    %257 = vector.load %arg11[%c3_134, %c0_135, %c0_136] : memref<4x1x1xf32, #tpu.memory_space<vmem>>, vector<1x1x1xf32>
    %258 = vector.shape_cast %257 : vector<1x1x1xf32> to vector<1x1xf32>
    %259 = vector.broadcast %258 : vector<1x1xf32> to vector<8x1xf32>
    %260 = arith.addf %256, %259 : vector<8x1xf32>
    %cst_137 = arith.constant 5.000000e+00 : f32
    %261 = vector.broadcast %cst_137 : f32 to vector<8x1xf32>
    %262 = arith.mulf %260, %261 : vector<8x1xf32>
    %263 = arith.negf %262 : vector<8x1xf32>
    %264 = math.exp %263 : vector<8x1xf32>
    %cst_138 = arith.constant 1.000000e+00 : f32
    %265 = vector.broadcast %cst_138 : f32 to vector<8x1xf32>
    %266 = arith.addf %265, %264 : vector<8x1xf32>
    %267 = arith.divf %265, %266 : vector<8x1xf32>
    %cst_139 = arith.constant 9.99999974E-6 : f32
    %268 = vector.broadcast %cst_139 : f32 to vector<8x1xf32>
    %269 = arith.addf %267, %268 : vector<8x1xf32>
    %cst_140 = arith.constant 1.09861231 : f32
    %270 = vector.broadcast %cst_140 : f32 to vector<8x1xf32>
    %271 = arith.mulf %269, %270 : vector<8x1xf32>
    %272 = math.exp %271 : vector<8x1xf32>
    %cst_141 = arith.constant 1.000000e+00 : f32
    %273 = vector.broadcast %cst_141 : f32 to vector<8x1xf32>
    %274 = arith.subf %272, %273 : vector<8x1xf32>
    %275 = tpu.reciprocal %274 : vector<8x1xf32> -> vector<8x1xf32>
    %cst_142 = arith.constant 0.398942292 : f32
    %276 = vector.broadcast %cst_142 : f32 to vector<8x1xf32>
    %277 = arith.mulf %276, %275 : vector<8x1xf32>
    %cst_143 = arith.constant -5.000000e-01 : f32
    %278 = vector.broadcast %cst_143 : f32 to vector<8x1xf32>
    %279 = arith.mulf %278, %275 : vector<8x1xf32>
    %280 = arith.mulf %279, %275 : vector<8x1xf32>
    %c0_144 = arith.constant 0 : index
    %c0_145 = arith.constant 0 : index
    %281 = vector.load %arg14[%c0_144, %c0_145] : memref<8x128xf32, #tpu.memory_space<vmem>>, vector<8x128xf32>
    %282 = vector.broadcast %280 : vector<8x1xf32> to vector<8x128xf32>
    %283 = arith.mulf %281, %282 : vector<8x128xf32>
    %284 = math.exp %283 : vector<8x128xf32>
    %285 = vector.broadcast %277 : vector<8x1xf32> to vector<8x128xf32>
    %286 = arith.mulf %285, %284 : vector<8x128xf32>
    %c0_146 = arith.constant 0 : index
    %c3_147 = arith.constant 3 : index
    %c0_148 = arith.constant 0 : index
    %c0_149 = arith.constant 0 : index
    %287 = vector.load %arg17[%c0_146, %c3_147, %c0_148, %c0_149] : memref<1x4x8x128xf32, #tpu.memory_space<vmem>>, vector<1x1x8x128xf32>
    %288 = vector.shape_cast %287 : vector<1x1x8x128xf32> to vector<8x128xf32>
    %289 = vector.shape_cast %250 : vector<8x128xf32> to vector<1x1x8x128xf32>
    tpu.vector_store %arg17[%c0_146, %c3_147, %c0_148, %c0_149], %289 {strides = array<i32>} : memref<1x4x8x128xf32, #tpu.memory_space<vmem>>, vector<1x1x8x128xf32>,
    %c0_150 = arith.constant 0 : index
    %c3_151 = arith.constant 3 : index
    %c0_152 = arith.constant 0 : index
    %c0_153 = arith.constant 0 : index
    %290 = vector.load %arg18[%c0_150, %c3_151, %c0_152, %c0_153] : memref<1x4x8x128xf32, #tpu.memory_space<vmem>>, vector<1x1x8x128xf32>
    %291 = vector.shape_cast %290 : vector<1x1x8x128xf32> to vector<8x128xf32>
    %292 = vector.shape_cast %286 : vector<8x128xf32> to vector<1x1x8x128xf32>
    tpu.vector_store %arg18[%c0_150, %c3_151, %c0_152, %c0_153], %292 {strides = array<i32>} : memref<1x4x8x128xf32, #tpu.memory_space<vmem>>, vector<1x1x8x128xf32>,
    %c0_154 = arith.constant 0 : index
    %c3_155 = arith.constant 3 : index
    %c0_156 = arith.constant 0 : index
    %c0_157 = arith.constant 0 : index
    %293 = vector.load %arg19[%c0_154, %c3_155, %c0_156, %c0_157] : memref<1x4x8x1xf32, #tpu.memory_space<vmem>>, vector<1x1x8x1xf32>
    %294 = vector.shape_cast %293 : vector<1x1x8x1xf32> to vector<8x1xf32>
    %295 = vector.shape_cast %274 : vector<8x1xf32> to vector<1x1x8x1xf32>
    tpu.vector_store %arg19[%c0_154, %c3_155, %c0_156, %c0_157], %295 {strides = array<i32>} : memref<1x4x8x1xf32, #tpu.memory_space<vmem>>, vector<1x1x8x1xf32>,
    %296 = arith.truncf %250 : vector<8x128xf32> to vector<8x128xbf16>
    %cst_158 = arith.constant dense<0.000000e+00> : vector<8x8xf32>
    %297 = tpu.matmul %296, %234, %cst_158 {dimension_numbers = #tpu.dot_dimension_numbers<[1], [0], [0], [1], [0, 0, 1, 1], [], []>} : vector<8x128xbf16>, vector<128x8xbf16>, vector<8x8xf32> -> vector<8x8xf32>
    %298 = tpu.concatenate %90, %159, %228, %297 in 1 : vector<8x8xf32>, vector<8x8xf32>, vector<8x8xf32>, vector<8x8xf32> -> vector<8x32xf32>
    %299 = arith.truncf %298 : vector<8x32xf32> to vector<8x32xbf16>
    %c0_159 = arith.constant 0 : index
    %c0_160 = arith.constant 0 : index
    %300 = vector.load %arg12[%c0_159, %c0_160] : memref<32x32xbf16, #tpu.memory_space<vmem>>, vector<32x32xbf16>
    %cst_161 = arith.constant dense<0.000000e+00> : vector<8x32xf32>
    %301 = tpu.matmul %299, %300, %cst_161 {dimension_numbers = #tpu.dot_dimension_numbers<[1], [0], [0], [1], [0, 0, 1, 1], [], []>} : vector<8x32xbf16>, vector<32x32xbf16>, vector<8x32xf32> -> vector<8x32xf32>
    %c0_162 = arith.constant 0 : index
    %c0_163 = arith.constant 0 : index
    %302 = vector.load %arg13[%c0_162, %c0_163] : memref<1x32xf32, #tpu.memory_space<vmem>>, vector<1x32xf32>
    %303 = vector.broadcast %302 : vector<1x32xf32> to vector<8x32xf32>
    %304 = arith.addf %301, %303 : vector<8x32xf32>
    %c0_164 = arith.constant 0 : index
    %c0_165 = arith.constant 0 : index
    %c0_166 = arith.constant 0 : index
    %305 = vector.load %arg16[%c0_164, %c0_165, %c0_166] : memref<1x8x32xf32, #tpu.memory_space<vmem>>, vector<1x8x32xf32>
    %306 = vector.shape_cast %305 : vector<1x8x32xf32> to vector<8x32xf32>
    %307 = vector.shape_cast %304 : vector<8x32xf32> to vector<1x8x32xf32>
    tpu.vector_store %arg16[%c0_164, %c0_165, %c0_166], %307 {strides = array<i32>} : memref<1x8x32xf32, #tpu.memory_space<vmem>>, vector<1x8x32xf32>,
    return
  }
  func.func @transform_0(%arg0: i32) -> (i32, i32, i32) {
    %c0_i32 = arith.constant 0 : i32
    %c0_i32_0 = arith.constant 0 : i32
    %c0_i32_1 = arith.constant 0 : i32
    return %arg0, %c0_i32, %c0_i32_0 : i32, i32, i32
  }
  func.func @transform_1(%arg0: i32) -> (i32, i32, i32) {
    %c0_i32 = arith.constant 0 : i32
    %c0_i32_0 = arith.constant 0 : i32
    %c0_i32_1 = arith.constant 0 : i32
    return %arg0, %c0_i32, %c0_i32_0 : i32, i32, i32
  }
  func.func @transform_2(%arg0: i32) -> (i32, i32, i32) {
    %c0_i32 = arith.constant 0 : i32
    %c0_i32_0 = arith.constant 0 : i32
    %c0_i32_1 = arith.constant 0 : i32
    return %arg0, %c0_i32, %c0_i32_0 : i32, i32, i32
  }
  func.func @transform_3(%arg0: i32) -> (i32, i32) {
    %c0_i32 = arith.constant 0 : i32
    %c0_i32_0 = arith.constant 0 : i32
    %c0_i32_1 = arith.constant 0 : i32
    return %c0_i32, %c0_i32_0 : i32, i32
  }
  func.func @transform_4(%arg0: i32) -> (i32, i32) {
    %c0_i32 = arith.constant 0 : i32
    %c0_i32_0 = arith.constant 0 : i32
    %c0_i32_1 = arith.constant 0 : i32
    return %c0_i32, %c0_i32_0 : i32, i32
  }
  func.func @transform_5(%arg0: i32) -> (i32, i32) {
    %c0_i32 = arith.constant 0 : i32
    %c0_i32_0 = arith.constant 0 : i32
    %c0_i32_1 = arith.constant 0 : i32
    return %c0_i32, %c0_i32_0 : i32, i32
  }
  func.func @transform_6(%arg0: i32) -> (i32, i32) {
    %c0_i32 = arith.constant 0 : i32
    %c0_i32_0 = arith.constant 0 : i32
    %c0_i32_1 = arith.constant 0 : i32
    return %c0_i32, %c0_i32_0 : i32, i32
  }
  func.func @transform_7(%arg0: i32) -> (i32, i32) {
    %c0_i32 = arith.constant 0 : i32
    %c0_i32_0 = arith.constant 0 : i32
    %c0_i32_1 = arith.constant 0 : i32
    return %c0_i32, %c0_i32_0 : i32, i32
  }
  func.func @transform_8(%arg0: i32) -> (i32, i32) {
    %c0_i32 = arith.constant 0 : i32
    %c0_i32_0 = arith.constant 0 : i32
    %c0_i32_1 = arith.constant 0 : i32
    return %c0_i32, %c0_i32_0 : i32, i32
  }
  func.func @transform_9(%arg0: i32) -> (i32, i32, i32) {
    %c0_i32 = arith.constant 0 : i32
    %c0_i32_0 = arith.constant 0 : i32
    %c0_i32_1 = arith.constant 0 : i32
    %c0_i32_2 = arith.constant 0 : i32
    return %c0_i32, %c0_i32_0, %c0_i32_1 : i32, i32, i32
  }
  func.func @transform_10(%arg0: i32) -> (i32, i32, i32) {
    %c0_i32 = arith.constant 0 : i32
    %c0_i32_0 = arith.constant 0 : i32
    %c0_i32_1 = arith.constant 0 : i32
    %c0_i32_2 = arith.constant 0 : i32
    return %c0_i32, %c0_i32_0, %c0_i32_1 : i32, i32, i32
  }
  func.func @transform_11(%arg0: i32) -> (i32, i32) {
    %c0_i32 = arith.constant 0 : i32
    %c0_i32_0 = arith.constant 0 : i32
    %c0_i32_1 = arith.constant 0 : i32
    return %c0_i32, %c0_i32_0 : i32, i32
  }
  func.func @transform_12(%arg0: i32) -> (i32, i32) {
    %c0_i32 = arith.constant 0 : i32
    %c0_i32_0 = arith.constant 0 : i32
    %c0_i32_1 = arith.constant 0 : i32
    return %c0_i32, %c0_i32_0 : i32, i32
  }
  func.func @transform_13(%arg0: i32) -> (i32, i32) {
    %c0_i32 = arith.constant 0 : i32
    %c0_i32_0 = arith.constant 0 : i32
    %c0_i32_1 = arith.constant 0 : i32
    return %c0_i32, %c0_i32_0 : i32, i32
  }
  func.func @transform_14(%arg0: i32) -> (i32, i32) {
    %c0_i32 = arith.constant 0 : i32
    %c0_i32_0 = arith.constant 0 : i32
    %c0_i32_1 = arith.constant 0 : i32
    return %c0_i32, %c0_i32_0 : i32, i32
  }
  func.func @transform_15(%arg0: i32) -> (i32, i32, i32) {
    %c0_i32 = arith.constant 0 : i32
    %c0_i32_0 = arith.constant 0 : i32
    %c0_i32_1 = arith.constant 0 : i32
    return %arg0, %c0_i32, %c0_i32_0 : i32, i32, i32
  }
  func.func @transform_16(%arg0: i32) -> (i32, i32, i32, i32) {
    %c0_i32 = arith.constant 0 : i32
    %c0_i32_0 = arith.constant 0 : i32
    %c0_i32_1 = arith.constant 0 : i32
    %c0_i32_2 = arith.constant 0 : i32
    return %arg0, %c0_i32, %c0_i32_0, %c0_i32_1 : i32, i32, i32, i32
  }
  func.func @transform_17(%arg0: i32) -> (i32, i32, i32, i32) {
    %c0_i32 = arith.constant 0 : i32
    %c0_i32_0 = arith.constant 0 : i32
    %c0_i32_1 = arith.constant 0 : i32
    %c0_i32_2 = arith.constant 0 : i32
    return %arg0, %c0_i32, %c0_i32_0, %c0_i32_1 : i32, i32, i32, i32
  }
  func.func @transform_18(%arg0: i32) -> (i32, i32, i32, i32) {
    %c0_i32 = arith.constant 0 : i32
    %c0_i32_0 = arith.constant 0 : i32
    %c0_i32_1 = arith.constant 0 : i32
    %c0_i32_2 = arith.constant 0 : i32
    return %arg0, %c0_i32, %c0_i32_0, %c0_i32_1 : i32, i32, i32, i32
  }
}

</mosaic_0001>

<bundles_post_ra>
// kernel: tpu_custom_call.1
= control target key start
LH: loop header
LB: loop body
LE: loop exit
PB: predicated region body
PF: predicated region fallthrough
CT: control target
= control target key end

     0   :  { %s3743_s0 = inlined_call_operand.vmem [shape: f32[2,8,32], index: 0, kind: input, shape index: {}]   ;;  %s3744_s1 = inlined_call_operand.vmem [shape: bf16[2,128,32], index: 1, kind: input, shape index: {}]   ;;  %s3745_s2 = inlined_call_operand.vmem [shape: bf16[2,128,32], index: 2, kind: input, shape index: {}]   ;;  %s3746_s3 = inlined_call_operand.vmem [shape: bf16[32,32], index: 3, kind: input, shape index: {}]   ;;  %s3747_s4 = inlined_call_operand.vmem [shape: f32[1,32], index: 4, kind: input, shape index: {}]   ;;  %s3748_s5 = inlined_call_operand.vmem [shape: bf16[32,32], index: 5, kind: input, shape index: {}]   ;;  %s3749_s6 = inlined_call_operand.vmem [shape: f32[1,32], index: 6, kind: input, shape index: {}]   ;;  %s3750_s7 = inlined_call_operand.vmem [shape: bf16[32,32], index: 7, kind: input, shape index: {}]   ;;  %s3751_s8 = inlined_call_operand.vmem [shape: f32[1,32], index: 8, kind: input, shape index: {}]   ;;  %s3752_s9 = inlined_call_operand.vmem [shape: f32[4,1,32], index: 9, kind: input, shape index: {}]   ;;  %s3753_s10 = inlined_call_operand.vmem [shape: f32[4,1,1], index: 10, kind: input, shape index: {}]   ;;  %s3754_s11 = inlined_call_operand.vmem [shape: bf16[32,32], index: 11, kind: input, shape index: {}]   ;;  %s3755_s12 = inlined_call_operand.vmem [shape: f32[1,32], index: 12, kind: input, shape index: {}]   ;;  %s3756_s13 = inlined_call_operand.vmem [shape: f32[8,128], index: 13, kind: input, shape index: {}]   ;;  %s3757_s14 = inlined_call_operand.vmem [shape: f32[1,128], index: 14, kind: input, shape index: {}]   ;;  %s3758_s15 = inlined_call_operand.hbm [shape: f32[2,8,32], index: 15, kind: output, shape index: {0}]   ;;  %s3759_s16 = inlined_call_operand.hbm [shape: f32[2,4,8,128], index: 16, kind: output, shape index: {1}]   ;;  %s3760_s17 = inlined_call_operand.hbm [shape: f32[2,4,8,128], index: 17, kind: output, shape index: {2}]   ;;  %s3761_s18 = inlined_call_operand.vmem [shape: f32[2,4,8,1], index: 18, kind: output, shape index: {3}]  }
   0x1   :  { %3771 = sst [smem:[#allocation13_spill]] %s3743_s0 }
   0x2   :  { %3772 = sst [smem:[#allocation14_spill]] %s3744_s1 }
   0x3   :  { %3773 = sst [smem:[#allocation15_spill]] %s3745_s2 }
   0x4   :  { %3774 = sst [smem:[#allocation16_spill]] %s3746_s3 }
   0x5   :  { %3775 = sst [smem:[#allocation17_spill]] %s3747_s4 }
   0x6   :  { %3776 = sst [smem:[#allocation18_spill]] %s3748_s5 }
   0x7   :  { %3777 = sst [smem:[#allocation19_spill]] %s3749_s6 }
   0x8   :  { %3778 = sst [smem:[#allocation20_spill]] %s3750_s7 }
   0x9   :  { %24 = vsyncpa [#allocation3], 0 }
   0xa   :  { %26 = vsyncpa [#allocation3 + $0x1], 0 }
   0xb   :  { %27 = vsyncpa [#allocation5], 0 }
   0xc   :  { %29 = vsyncpa [#allocation5 + $0x1], 0  ;;  %s3124_s27 = smov 0   ;;  %s3126_s28 = smov 0  }
   0xd   :  { %s3128_s29 = smov 0   ;;  %s3130_s30 = smov 0  }
   0xe LB: > { %3779 = sst [smem:[#allocation9_spill]] %s3010_s29  ;;  %s3145_s0 = sadd.s32 4294967295, %s3014_s30   ;;  %s3014_s30 = sphi %s3130_s30, %s3798_s30   ;;  %s3010_s29 = sphi %s3128_s29, %s3800_s29   ;;  %s3006_s28 = sphi %s3126_s28, %s3802_s28   ;;  %s3002_s27 = sphi %s3124_s27, %s3801_s27  }
   0xf   : > { %s3762_s19 = sadd.s32 4294967294, %s3014_s30   ;;  %s3149_s1 = sadd.s32 1, %s3014_s30  }
  0x10   : > { %3780 = sst [smem:[#allocation10_spill]] %s3149_s1  ;;  %s372_s20 = sadd.s32 1, %s3010_s29 }
  0x11   : > { %s369_s21 = ssub.s32 %s3014_s30, %s3149_s1  ;;  %p382_p0 = scmp.ne.s32.totalorder %s3010_s29, %s3006_s28 }
  0x12   : > { %p370_p1 = scmp.eq.s32.totalorder %s369_s21, 0  ;;  %p383_p2 = scmp.eq.s32.totalorder %s3145_s0, 1 }
  0x13   : > { %p388_p3 = scmp.ne.s32.totalorder %s3006_s28, %s3002_s27  ;;  %p389_p4 = scmp.eq.s32.totalorder %s3762_s19, 1 }
  0x14   : > { %s3162_s22 = scalar_select %p370_p1, %s3010_s29, %s372_s20  }
  0x15   : > { %p3164_p5 = por %p383_p2, %p382_p0  ;;  %p3168_p6 = por %p389_p4, %p388_p3 }
  0x16   : > { %3781 = sst [smem:[#allocation11_spill]] %s3162_s22  ;;  %p2325_p7 = scmp.ge.s32.totalorder %s3014_s30, 1 }
  0x17   : > { %s3783_s23 = scalar_select %p3168_p6, 1, 0 }
  0x18   : > { %p544_p8 = scmp.lt.s32.totalorder %s3014_s30, 3 }
  0x19   : > { %3784 = sst [smem:[#allocation12_spill]] %s3783_s23 }
  0x1a   : > { %p545_p9 = pnand %p2325_p7, %p544_p8 }
  0x1b   : > { %s3785_s5 = sld [smem:[#allocation18_spill]] (!%p545_p9)  ;;  %p622_p10 = scmp.lt.s32.totalorder (!%p545_p9), %s3145_s0, 1  ;;  %v3016_v2 = vmov (!%p545_p9), 0.0   ;;  %vm699_vm0 = vcmask (!%p545_p9), 261120   ;;  %vm3017_vm1 = vmmov (!%p545_p9), 0   ;;  %vm1128_vm2 = vcmask (!%p545_p9), 64512  }
  0x1c   : > { %548 = sbr.rel (%p545_p9) target bundleno = 3254 (0xcb6), region = 80  ;;  %2534 = vmatprep.subr.bf16.mxu0 (!%p545_p9), %v3016_v2  ;;  %s3786_s3 = sld [smem:[#allocation16_spill]] (!%p545_p9)  ;;  %2538 = vmatprep.mubr.msk.bf16.mxu0 (!%p545_p9), %vm3017_vm1, %v3016_v2  ;;  %vm1266_vm3 = vcmask (!%p545_p9), 7168   ;;  %vm2017_vm4 = vcmask (!%p545_p9), 130048   ;;  %vm2019_vm5 = vcmask (!%p545_p9), 195584  }
  0x1d   : > { %s3790_s6 = sld [smem:[#allocation19_spill]] (!%p545_p9)  ;;  %s3791_s4 = sld [smem:[#allocation17_spill]] (!%p545_p9) }
  0x1e   : > { %s3792_s7 = sld [smem:[#allocation20_spill]] (!%p545_p9)  ;;  %s3373_s29 = sand.u32 (!%p545_p9), 1, %s3006_s28  }
  0x1f   : > { %s3767_s22 = sshll.u32 (!%p545_p9), %s3373_s29, 5  ;;  %s3019_s26 = smov (!%p545_p9), 112  }
  0x20   : > { %s3768_s20 = smov (!%p545_p9), 8  }
  0x21   : > { %v2811_v0 = vld [vmem:[%s3785_s5] sm:$0xff] (!%p545_p9)   ;;  %v2812_v1 = vld [vmem:[%s3785_s5 + $0x8] sm:$0xff] (!%p545_p9)   ;;  %s3787_s5 = sld [smem:[#allocation14_spill]] (!%p545_p9) }
  0x22   : > { %2542 = vmatprep.subr.bf16.mxu1 (!%p545_p9), %v2811_v0  ;;  %v2821_v3 = vld [vmem:[%s3786_s3] sm:$0xff] (!%p545_p9)   ;;  %v2822_v4 = vld [vmem:[%s3786_s3 + $0x8] sm:$0xff] (!%p545_p9)   ;;  %s3789_s3 = sld [smem:[#allocation15_spill]] (!%p545_p9) }
  0x23   : > { %s3182_s21 = scalar_select %p622_p10, %s3145_s0, 1  ;;  %2543 = vmatpush3.bf16.msra.mxu1 %v2811_v0  ;;  %2535 = vmatpush3.bf16.msra.mxu0 %v2821_v3  ;;  %v2340_v16 = vld [vmem:[%s3790_s6] ss:$0 sm:$0xff] }
  0x24   : > { %2544 = vmatprep.subr.bf16.mxu1 %v2812_v1  ;;  %2536 = vmatprep.subr.bf16.mxu0 %v3016_v2  ;;  %v2336_v62 = vld [vmem:[%s3791_s4] ss:$0 sm:$0xff] }
  0x25   : > { %s2431_s24 = sshll.u32 %s3182_s21, 6  ;;  %s2329_s19 = sshll.u32 %s3182_s21, 3 }
  0x27   : > { %s630_s1 = scalar_lea.vmem %s3787_s5, %s2431_s24  ;;  %2545 = vmatpush3.bf16.msra.mxu1 %v2812_v1  ;;  %2537 = vmatpush3.bf16.msra.mxu0 %v2822_v4  ;;  %s3788_s5 = sld [smem:[#allocation13_spill]] }
  0x28   : > { %v2813_v5 = vld [vmem:[%s630_s1] sm:$0xff]   ;;  %v2814_v6 = vld [vmem:[%s630_s1 + $0x8] sm:$0xff]   ;;  %v2815_v7 = vld [vmem:[%s630_s1 + $0x10] sm:$0xff]   ;;  %2582 = vmatprep.subr.bf16.mxu1 %v3016_v2  ;;  %s3211_s23 = scalar_lea.vmem %s3789_s3, %s2431_s24  ;;  %s3022_s3 = smov 16  }
  0x29   : > { %2546 = vmatprep.mubr.msk.bf16.mxu1 %vm699_vm0, %v2813_v5  ;;  %v2816_v8 = vld [vmem:[%s630_s1 + $0x18] sm:$0xff]   ;;  %v2817_v9 = vld [vmem:[%s630_s1 + $0x20] sm:$0xff]   ;;  %v2818_v12 = vld [vmem:[%s630_s1 + $0x28] sm:$0xff]  }
  0x2a   : > { %2547 = vmatmul.mubr.msk.bf16.vlgmr.msra.gmra.mrb[0].mxu1 %vm699_vm0, %v2814_v6  ;;  %v2819_v13 = vld [vmem:[%s630_s1 + $0x30] sm:$0xff]   ;;  %v2820_v14 = vld [vmem:[%s630_s1 + $0x38] sm:$0xff]   ;;  %s3018_s1 = smov 120  }
  0x2b   : > { %2550 = vmatprep.mubr.msk.bf16.mxu1 %vm699_vm0, %v2815_v7 }
  0x2d   : > { %s3206_s25 = scalar_lea.vmem %s3788_s5, %s2329_s19  ;;  %s3378_s5 = scalar_lea.vmem [#allocation4], %s3767_s22 }
  0x2e   : > { %v642_v10 = vld [vmem:[%s3206_s25] sm:$0xff] }
  0x2f   : > { %v675_v11 = vpack.c.bf16 %v642_v10, %v642_v10  ;;  %v2825_v10 = vld [vmem:[%s3211_s23] sm:$0xff]  }
  0x31   : > { %2539 = vmatmul.mubr.msk.bf16.vlgmr.msra.gmra.mrb[0].mxu0 %vm699_vm0, %v675_v11  ;;  %v2826_v11 = vld [vmem:[%s3211_s23 + $0x8] sm:$0xff]  }
  0x32   : > { %2551 = vmatmul.mubr.msk.bf16.gmra.mrb[4].mxu1 %vm699_vm0, %v2816_v8  ;;  %v2823_v8 = vld [vmem:[%s3792_s7] sm:$0xff]   ;;  %2566 = vmatprep.mubr.msk.bf16.mxu0 %vm699_vm0, %v2825_v10 }
  0x33   : > { %2554 = vmatprep.mubr.msk.bf16.mxu1 %vm699_vm0, %v2817_v9  ;;  %v2824_v9 = vld [vmem:[%s3792_s7 + $0x8] sm:$0xff]   ;;  %2562 = vmatprep.subr.bf16.mxu0 %v2823_v8 }
  0x34   : > { %2563 = vmatpush3.bf16.msra.mxu0 %v2823_v8 }
  0x35   : > { %2564 = vmatprep.subr.bf16.mxu0 %v2824_v9 }
  0x38   : > { %2565 = vmatpush3.bf16.msra.mxu0 %v2824_v9 }
  0x39   : > { %2602 = vmatprep.subr.bf16.mxu0 %v3016_v2 }
  0x3a   : > { %2555 = vmatmul.mubr.msk.bf16.gmra.mrb[8].mxu1 %vm699_vm0, %v2818_v12  ;;  %v2827_v12 = vld [vmem:[%s3211_s23 + $0x10] sm:$0xff]  }
  0x3b   : > { %2558 = vmatprep.mubr.msk.bf16.mxu1 %vm699_vm0, %v2819_v13  ;;  %2567 = vmatmul.mubr.msk.bf16.vlgmr.msra.gmra.mrb[4].mxu0 %vm699_vm0, %v2826_v11  ;;  %v2828_v13 = vld [vmem:[%s3211_s23 + $0x18] sm:$0xff]  }
  0x3c   : > { %2570 = vmatprep.mubr.msk.bf16.mxu0 %vm699_vm0, %v2827_v12 }
  0x42   : > { %2559 = vmatmul.mubr.msk.bf16.gmra.mrb[12].mxu1 %vm699_vm0, %v2820_v14  ;;  %v2829_v14 = vld [vmem:[%s3211_s23 + $0x20] sm:$0xff]  }
  0x43   : > { %2598 = vmatprep.mubr.msk.bf16.mxu1 %vm3017_vm1, %v3016_v2  ;;  %2571 = vmatmul.mubr.msk.bf16.gmra.mrb[8].mxu0 %vm699_vm0, %v2828_v13 }
  0x44   : > { %2574 = vmatprep.mubr.msk.bf16.mxu0 %vm699_vm0, %v2829_v14 }
  0xfd   : > { %v2548_v15 = vpop.f32.mrb[0].mxu1 }
  0xfe   : > { %v864_v17 = vpop.f32.mrb[1].mxu1  ;;  %v873_v19 = vadd.f32 %v2548_v15, %v2340_v16  ;;  %v2830_v15 = vld [vmem:[%s3211_s23 + $0x28] sm:$0xff]  }
  0xff   : > { %v2549_v18 = vpop.f32.mrb[2].mxu1  ;;  %v865_v22 = vadd.f32 %v2340_v16, %v864_v17  ;;  %2575 = vmatmul.mubr.msk.bf16.gmra.mrb[12].mxu0 %vm699_vm0, %v2830_v15  ;;  %v2832_v17 = vld [vmem:[%s3211_s23 + $0x38] sm:$0xff]  }
 0x100   : > { %v876_v20 = vadd.f32 %v2549_v18, %v2340_v16  ;;  %v867_v21 = vpop.f32.mrb[3].mxu1 }
 0x101   : > { %v868_v23 = vadd.f32 %v2340_v16, %v867_v21 }
 0x102   : > { %v3225_v24 = vpack.c.bf16 %v876_v20, %v873_v19  ;;  %v3318_v19 = vld [vmem:[%s3757_s14] ss:$0 sm:$0xff] }
 0x103   : > { %v3227_v25 = vpack.c.bf16 %v868_v23, %v865_v22 }
 0x104   : > { %v737_v26 = vpop.f32.mrb[0].mxu0  ;;  %v1136_v41 = vsel %vm1128_vm2, %v3225_v24, 0 }
 0x105   : > { %1320 = vrot.lane.b32.xlu1 %v3227_v25, %s3018_s1  ;;  %v1133_v27 = vsel %vm1128_vm2, %v3227_v25, 0  ;;  %v2552_v28 = vpop.f32.mrb[4].mxu1  ;;  %v2540_v29 = vpop.f32.mrb[1].mxu0  ;;  %v738_v1 = vadd.f32 %v2336_v62, %v737_v26 }
 0x106   : > { %2583 = vmatpush3.bf16.xpose.msra.mxu1 %v1133_v27  ;;  %v889_v30 = vadd.f32 %v2552_v28, %v2340_v16  ;;  %v880_v31 = vpop.f32.mrb[5].mxu1  ;;  %v740_v32 = vpop.f32.mrb[2].mxu0  ;;  %v2359_v27 = vld [vmem:[%s3751_s8] ss:$0 sm:$0xff] }
 0x107   : > { %v881_v33 = vadd.f32 %v2340_v16, %v880_v31  ;;  %v2553_v34 = vpop.f32.mrb[6].mxu1  ;;  %2584 = vmatprep.subr.bf16.mxu1 %v3016_v2  ;;  %v2541_v35 = vpop.f32.mrb[3].mxu0  ;;  %v3270_v3 = vpack.c.bf16 %v738_v1, %v738_v1 }
 0x108   : > { %v892_v36 = vadd.f32 %v2553_v34, %v2340_v16  ;;  %v883_v37 = vpop.f32.mrb[7].mxu1 }
 0x109   : > { %1322 = vrot.lane.b32.xlu1 %v3225_v24, %s3018_s1  ;;  %v884_v38 = vadd.f32 %v2340_v16, %v883_v37 }
 0x10a   : > { %v3236_v39 = vpack.c.bf16 %v892_v36, %v889_v30 }
 0x10b   : > { %v3238_v40 = vpack.c.bf16 %v884_v38, %v881_v33 }
 0x10c   : > { %v1142_v0 = vsel %vm1128_vm2, %v3236_v39, 0 }
 0x10d   : > { %1326 = vrot.lane.b32.xlu1 %v3236_v39, %s3018_s1  ;;  %v2556_v42 = vpop.f32.mrb[8].mxu1  ;;  %v1139_v52 = vsel %vm1128_vm2, %v3238_v40, 0 }
 0x10e   : > { %2585 = vmatpush3.bf16.xpose.msra.mxu1 %v1136_v41  ;;  %v905_v43 = vadd.f32 %v2556_v42, %v2340_v16  ;;  %v896_v44 = vpop.f32.mrb[9].mxu1  ;;  %v2568_v28 = vpop.f32.mrb[4].mxu0 }
 0x10f   : > { %2586 = vmatprep.subr.bf16.mxu1 %v3016_v2  ;;  %v897_v45 = vadd.f32 %v2340_v16, %v896_v44  ;;  %v2557_v46 = vpop.f32.mrb[10].mxu1  ;;  %v1057_v29 = vadd.f32 %v2568_v28, %v2359_v27  ;;  %v1048_v30 = vpop.f32.mrb[5].mxu0 }
 0x110   : > { %v908_v47 = vadd.f32 %v2557_v46, %v2340_v16  ;;  %v899_v48 = vpop.f32.mrb[11].mxu1  ;;  %v1049_v31 = vadd.f32 %v2359_v27, %v1048_v30  ;;  %v2569_v32 = vpop.f32.mrb[6].mxu0 }
 0x111   : > { %v900_v49 = vadd.f32 %v2340_v16, %v899_v48  ;;  %v1060_v33 = vadd.f32 %v2569_v32, %v2359_v27  ;;  %v1051_v34 = vpop.f32.mrb[7].mxu0 }
 0x112   : > { %v3245_v50 = vpack.c.bf16 %v908_v47, %v905_v43  ;;  %v1052_v35 = vadd.f32 %v2359_v27, %v1051_v34 }
 0x113   : > { %v3247_v51 = vpack.c.bf16 %v900_v49, %v897_v45  ;;  %v3327_v36 = vpack.c.bf16 %v1060_v33, %v1057_v29 }
 0x114   : > { %v1148_v5 = vsel %vm1128_vm2, %v3245_v50, 0  ;;  %v3329_v37 = vpack.c.bf16 %v1052_v35, %v1049_v31 }
 0x115   : > { %1328 = vrot.lane.b32.xlu1 %v3247_v51, %s3018_s1  ;;  %v2560_v53 = vpop.f32.mrb[12].mxu1  ;;  %v1145_v4 = vsel %vm1128_vm2, %v3247_v51, 0 }
 0x116   : > { %2587 = vmatpush3.bf16.xpose.msra.mxu1 %v1139_v52  ;;  %v921_v54 = vadd.f32 %v2560_v53, %v2340_v16  ;;  %v912_v55 = vpop.f32.mrb[13].mxu1  ;;  %v2572_v38 = vpop.f32.mrb[8].mxu0  ;;  %2603 = vmatpush3.bf16.msra.mxu0 %v3329_v37 }
 0x117   : > { %2588 = vmatprep.subr.bf16.mxu1 %v3016_v2  ;;  %v913_v56 = vadd.f32 %v2340_v16, %v912_v55  ;;  %v2561_v57 = vpop.f32.mrb[14].mxu1  ;;  %v1073_v41 = vadd.f32 %v2572_v38, %v2359_v27  ;;  %v1064_v42 = vpop.f32.mrb[9].mxu0  ;;  %2604 = vmatprep.subr.bf16.mxu0 %v3016_v2 }
 0x118   : > { %v924_v58 = vadd.f32 %v2561_v57, %v2340_v16  ;;  %v915_v59 = vpop.f32.mrb[15].mxu1  ;;  %v1065_v43 = vadd.f32 %v2359_v27, %v1064_v42  ;;  %v2573_v44 = vpop.f32.mrb[10].mxu0 }
 0x119   : > { %1330 = vrot.lane.b32.xlu1 %v3245_v50, %s3018_s1  ;;  %v916_v60 = vadd.f32 %v2340_v16, %v915_v59  ;;  %v2831_v16 = vld [vmem:[%s3211_s23 + $0x30] sm:$0xff]   ;;  %v1076_v45 = vadd.f32 %v2573_v44, %v2359_v27  ;;  %v1067_v46 = vpop.f32.mrb[11].mxu0  ;;  %s3023_s23 = smov 24  }
 0x11a   : > { %v3256_v61 = vpack.c.bf16 %v924_v58, %v921_v54  ;;  %2578 = vmatprep.mubr.msk.bf16.mxu0 %vm699_vm0, %v2831_v16  ;;  %v1068_v47 = vadd.f32 %v2359_v27, %v1067_v46  ;;  %2605 = vmatpush3.bf16.msra.mxu0 %v3327_v36 }
 0x11b   : > { %v3261_v63 = vpack.c.bf16 %v916_v60, %v913_v56  ;;  %2579 = vmatmul.mubr.msk.bf16.gmra.mrb[16].mxu0 %vm699_vm0, %v2832_v17  ;;  %v3338_v48 = vpack.c.bf16 %v1076_v45, %v1073_v41  ;;  %2606 = vmatprep.subr.bf16.mxu0 %v3016_v2 }
 0x11c   : > { %v1154_v7 = vsel %vm1128_vm2, %v3256_v61, 0  ;;  %2618 = vmatprep.mubr.msk.bf16.mxu0 %vm3017_vm1, %v3016_v2  ;;  %v3341_v49 = vpack.c.bf16 %v1068_v47, %v1065_v43 }
 0x11d   : > { %1332 = vrot.lane.b32.xlu1 %v3261_v63, %s3018_s1  ;;  %v1151_v6 = vsel %vm1128_vm2, %v3261_v63, 0 }
 0x11e   : > { %2589 = vmatpush3.bf16.xpose.msra.mxu1 %v1142_v0  ;;  %2607 = vmatpush3.bf16.msra.mxu0 %v3341_v49 }
 0x11f   : > { %2590 = vmatprep.subr.bf16.mxu1 %v3016_v2  ;;  %2608 = vmatprep.subr.bf16.mxu0 %v3016_v2 }
 0x121   : > { %1334 = vrot.lane.b32.xlu1 %v3256_v61, %s3018_s1 }
 0x122   : > { %2609 = vmatpush3.bf16.msra.mxu0 %v3338_v48 }
 0x123   : > { %2610 = vmatprep.subr.bf16.mxu0 %v3016_v2 }
 0x125   : > { %1310 = vrot.lane.b32.xlu1 %v3270_v3, %s3018_s1 }
 0x126   : > { %2591 = vmatpush3.bf16.xpose.msra.mxu1 %v1145_v4 }
 0x127   : > { %2592 = vmatprep.subr.bf16.mxu1 %v3016_v2 }
 0x129   : > { %1488 = vrot.lane.b32.xlu1 %v3329_v37, %s3018_s1 }
 0x12d   : > { %1490 = vrot.lane.b32.xlu1 %v3327_v36, %s3018_s1 }
 0x12e   : > { %2593 = vmatpush3.bf16.xpose.msra.mxu1 %v1148_v5 }
 0x12f   : > { %2594 = vmatprep.subr.bf16.mxu1 %v3016_v2 }
 0x131   : > { %1494 = vrot.lane.b32.xlu1 %v3338_v48, %s3018_s1 }
 0x136   : > { %2595 = vmatpush3.bf16.xpose.msra.mxu1 %v1151_v6 }
 0x137   : > { %2596 = vmatprep.subr.bf16.mxu1 %v3016_v2 }
 0x13e   : > { %2597 = vmatpush3.bf16.xpose.msra.mxu1 %v1154_v7 }
 0x13f   : > { %2642 = vmatprep.subr.bf16.mxu1 %v3016_v2 }
 0x145   : > { %2599 = vmatmul.mubr.msk.bf16.vlgmr.msra.gmra.mrb[16].mxu1 %vm1128_vm2, %v3270_v3 }
 0x146   : > { %2658 = vmatprep.mubr.msk.bf16.mxu1 %vm3017_vm1, %v3016_v2 }
 0x177   : > { %v1321_v16 = vpop.permute.xlu1 %1320 }
 0x178   : > { %v1340_v33 = vsel %vm1128_vm2, %v1321_v16, 0 }
 0x17b   : > { %v1323_v17 = vpop.permute.xlu1 %1322 }
 0x17c   : > { %v1343_v34 = vsel %vm1128_vm2, %v1323_v17, 0 }
 0x1d2   : > { %v2576_v52 = vpop.f32.mrb[12].mxu0 }
 0x1d3   : > { %v1089_v53 = vadd.f32 %v2576_v52, %v2359_v27  ;;  %v1080_v54 = vpop.f32.mrb[13].mxu0 }
 0x1d4   : > { %v1081_v55 = vadd.f32 %v2359_v27, %v1080_v54  ;;  %v2577_v56 = vpop.f32.mrb[14].mxu0 }
 0x1d5   : > { %v1092_v57 = vadd.f32 %v2577_v56, %v2359_v27  ;;  %v1083_v58 = vpop.f32.mrb[15].mxu0 }
 0x1d6   : > { %v1084_v59 = vadd.f32 %v2359_v27, %v1083_v58 }
 0x1d7   : > { %v3348_v60 = vpack.c.bf16 %v1092_v57, %v1089_v53 }
 0x1d8   : > { %v3351_v62 = vpack.c.bf16 %v1084_v59, %v1081_v55 }
 0x1da   : > { %2611 = vmatpush3.bf16.msra.mxu0 %v3351_v62 }
 0x1db   : > { %2612 = vmatprep.subr.bf16.mxu0 %v3016_v2 }
 0x1de   : > { %2613 = vmatpush3.bf16.msra.mxu0 %v3348_v60 }
 0x1df   : > { %2614 = vmatprep.subr.bf16.mxu0 %v3016_v2 }
 0x1ee   : > { %v2580_v0 = vpop.f32.mrb[16].mxu0 }
 0x1ef   : > { %v1105_v1 = vadd.f32 %v2580_v0, %v2359_v27  ;;  %v1096_v4 = vpop.f32.mrb[17].mxu0 }
 0x1f0   : > { %v1097_v5 = vadd.f32 %v2359_v27, %v1096_v4  ;;  %v2581_v6 = vpop.f32.mrb[18].mxu0 }
 0x1f1   : > { %v1108_v7 = vadd.f32 %v2581_v6, %v2359_v27  ;;  %v1099_v8 = vpop.f32.mrb[19].mxu0 }
 0x1f2   : > { %v1100_v9 = vadd.f32 %v2359_v27, %v1099_v8 }
 0x1f3   : > { %v3356_v10 = vpack.c.bf16 %v1108_v7, %v1105_v1 }
 0x1f4   : > { %v3359_v11 = vpack.c.bf16 %v1100_v9, %v1097_v5 }
 0x1f5   : > { %1502 = vrot.lane.b32.xlu1 %v3356_v10, %s3018_s1 }
 0x1f6   : > { %2615 = vmatpush3.bf16.msra.mxu0 %v3359_v11 }
 0x1f7   : > { %2616 = vmatprep.subr.bf16.mxu0 %v3016_v2 }
 0x1fa   : > { %2617 = vmatpush3.bf16.msra.mxu0 %v3356_v10 }
 0x1fb   : > { %2622 = vmatprep.subr.bf16.mxu0 %v3016_v2 }
 0x218   : > { %v1190_v18 = vpop.f32.mrb[16].mxu1 }
 0x219   : > { %v1196_v20 = vmul.f32 0.35355338, %v1190_v18  ;;  %v2600_v21 = vpop.f32.mrb[17].mxu1  ;;  %v1327_v18 = vpop.permute.xlu1 %1326 }
 0x21a   : > { %v1193_v22 = vpop.f32.mrb[18].mxu1  ;;  %v1349_v41 = vsel %vm1128_vm2, %v1327_v18, 0 }
 0x21b   : > { %v2601_v23 = vpop.f32.mrb[19].mxu1  ;;  %v3321_v26 = vadd.f32 %v3318_v19, %v1196_v20 }
 0x21d   : > { %1205 = vmax.xlane.f32.xlu0 %v3321_v26  ;;  %v1329_v20 = vpop.permute.xlu1 %1328 }
 0x21e   : > { %v1352_v42 = vsel %vm1128_vm2, %v1329_v20, 0 }
 0x221   : > { %v1331_v21 = vpop.permute.xlu1 %1330 }
 0x222   : > { %v1355_v43 = vsel %vm1128_vm2, %v1331_v21, 0 }
 0x225   : > { %v1333_v22 = vpop.permute.xlu1 %1332 }
 0x226   : > { %v1358_v44 = vsel %vm1128_vm2, %v1333_v22, 0 }
 0x229   : > { %v1335_v23 = vpop.permute.xlu1 %1334 }
 0x22a   : > { %v1361_v45 = vsel %vm1128_vm2, %v1335_v23, 0 }
 0x22d   : > { %v1311_v27 = vpop.permute.xlu1 %1310 }
 0x231   : > { %v1489_v28 = vpop.permute.xlu1 %1488 }
 0x232   : > { %2643 = vmatpush3.bf16.msra.mxu1 %v1489_v28 }
 0x233   : > { %2644 = vmatprep.subr.bf16.mxu1 %v3016_v2 }
 0x2aa   : > { %v1206_v12 = vpop.xlane.xlu0 %1205 }
 0x2ab   : > { %v1207_v13 = vsub.f32 %v3321_v26, %v1206_v12  ;;  %v1491_v26 = vpop.permute.xlu1 %1490 }
 0x2ac   : > { %2645 = vmatpush3.bf16.msra.mxu1 %v1491_v26 }
 0x2ad   : > { %v1208_v14 = vmul.f32 1.442695, %v1207_v13  ;;  %2646 = vmatprep.subr.bf16.mxu1 %v3016_v2 }
 0x2af   : > { %2835 = vpow2.f32 %v1208_v14  ;;  %v1495_v6 = vpop.permute.xlu1 %1494 }
 0x2b3   : > { %v1503_v14 = vpop.permute.xlu1 %1502 }
 0x2b9   : > { %v2836_v15 = vpop.eup %2835 }
 0x2ba   : > { %1210 = vadd.xlane.f32.xlu0 %v2836_v15 }
 0x2d0   : > { %1324 = vrot.lane.b32.xlu0 %v3238_v40, %s3018_s1 }
 0x347   : > { %v1211_v29 = vpop.xlane.xlu0 %1210 }
 0x348   : > { %2837 = vrcp.f32 %v1211_v29 }
 0x34b   : > { %v1325_v35 = vpop.permute.xlu0 %1324 }
 0x34c   : > { %v1346_v38 = vsel %vm1128_vm2, %v1325_v35, 0 }
 0x352   : > { %v2838_v30 = vpop.eup %2837 }
 0x353   : > { %v1213_v31 = vmul.f32 %v2838_v30, %v2836_v15 }
 0x355   : > { %v1268_v32 = vpack.c.bf16 %v1213_v31, %v1213_v31  ;;  %1264 = vst [vmem:[%s3378_s5] sm:$0xff] %v1213_v31 }
 0x357   : > { %2619 = vmatmul.mubr.bf16.vlgmr.msra.gmra.mrb[20].mxu0 %v1268_v32 }
 0x358   : > { %2623 = vmatpush3.bf16.xpose.msra.mxu0 %v1340_v33  ;;  %2638 = vmatprep.mubr.msk.bf16.mxu0 %vm3017_vm1, %v3016_v2 }
 0x359   : > { %2624 = vmatprep.subr.bf16.mxu0 %v3016_v2 }
 0x360   : > { %2625 = vmatpush3.bf16.xpose.msra.mxu0 %v1343_v34 }
 0x361   : > { %2626 = vmatprep.subr.bf16.mxu0 %v3016_v2 }
 0x368   : > { %2627 = vmatpush3.bf16.xpose.msra.mxu0 %v1346_v38 }
 0x369   : > { %2628 = vmatprep.subr.bf16.mxu0 %v3016_v2 }
 0x370   : > { %2629 = vmatpush3.bf16.xpose.msra.mxu0 %v1349_v41 }
 0x371   : > { %2630 = vmatprep.subr.bf16.mxu0 %v3016_v2 }
 0x378   : > { %2631 = vmatpush3.bf16.xpose.msra.mxu0 %v1352_v42 }
 0x379   : > { %2632 = vmatprep.subr.bf16.mxu0 %v3016_v2 }
 0x380   : > { %2633 = vmatpush3.bf16.xpose.msra.mxu0 %v1355_v43 }
 0x381   : > { %2634 = vmatprep.subr.bf16.mxu0 %v3016_v2 }
 0x388   : > { %2635 = vmatpush3.bf16.xpose.msra.mxu0 %v1358_v44 }
 0x389   : > { %2636 = vmatprep.subr.bf16.mxu0 %v3016_v2 }
 0x390   : > { %2637 = vmatpush3.bf16.xpose.msra.mxu0 %v1361_v45 }
 0x391   : > { %2682 = vmatprep.subr.bf16.mxu0 %v3016_v2 }
 0x397   : > { %2639 = vmatmul.mubr.msk.bf16.vlgmr.msra.gmra.mrb[24].mxu0 %vm1128_vm2, %v1311_v27 }
 0x398   : > { %2698 = vmatprep.mubr.msk.bf16.mxu0 %vm3017_vm1, %v3016_v2 }
 0x42a   : > { %v3402_v46 = vpop.f32.mrb[20].mxu0 }
 0x42b   : > { %v2620_v47 = vpop.f32.mrb[21].mxu0 }
 0x42c   : > { %v1306_v52 = vpop.f32.mrb[22].mxu0 }
 0x42d   : > { %v2621_v53 = vpop.f32.mrb[23].mxu0 }
 0x46a   : > { %v1397_v54 = vpop.f32.mrb[24].mxu0 }
 0x46b   : > { %v1403_v55 = vmul.f32 0.35355338, %v1397_v54  ;;  %v2640_v56 = vpop.f32.mrb[25].mxu0 }
 0x46c   : > { %v1400_v57 = vpop.f32.mrb[26].mxu0 }
 0x46d   : > { %v2641_v58 = vpop.f32.mrb[27].mxu0  ;;  %v1411_v59 = vadd.f32 %v3318_v19, %v1403_v55 }
 0x46f   : > { %1412 = vmax.xlane.f32.xlu0 %v1411_v59 }
 0x485   : > { %1492 = vrot.lane.b32.xlu0 %v3341_v49, %s3018_s1 }
 0x489   : > { %1496 = vrot.lane.b32.xlu0 %v3351_v62, %s3018_s1 }
 0x48d   : > { %1498 = vrot.lane.b32.xlu0 %v3348_v60, %s3018_s1 }
 0x491   : > { %1500 = vrot.lane.b32.xlu0 %v3359_v11, %s3018_s1  ;;  %s3020_s1 = smov 104  }
 0x495   : > { %1554 = vrot.lane.b32.xlu0 %v3227_v25, %s3019_s26 }
 0x499   : > { %1558 = vrot.lane.b32.xlu0 %v3238_v40, %s3019_s26 }
 0x49d   : > { %1562 = vrot.lane.b32.xlu0 %v3247_v51, %s3019_s26 }
 0x4a1   : > { %1566 = vrot.lane.b32.xlu0 %v3261_v63, %s3019_s26 }
 0x4a5   : > { %1552 = vrot.lane.b32.xlu0 %v3270_v3, %s3019_s26 }
 0x4a9   : > { %1714 = vrot.lane.b32.xlu0 %v3329_v37, %s3019_s26 }
 0x4ad   : > { %1716 = vrot.lane.b32.xlu0 %v3327_v36, %s3019_s26 }
 0x4b1   : > { %1720 = vrot.lane.b32.xlu0 %v3338_v48, %s3019_s26 }
 0x4fc   : > { %v1413_v0 = vpop.xlane.xlu0 %1412 }
 0x4fd   : > { %v1414_v1 = vsub.f32 %v1411_v59, %v1413_v0 }
 0x4ff   : > { %v1415_v4 = vmul.f32 1.442695, %v1414_v1 }
 0x500   : > { %v1493_v5 = vpop.permute.xlu0 %1492 }
 0x501   : > { %2839 = vpow2.f32 %v1415_v4  ;;  %2647 = vmatpush3.bf16.msra.mxu1 %v1493_v5 }
 0x502   : > { %2648 = vmatprep.subr.bf16.mxu1 %v3016_v2 }
 0x504   : > { %v1497_v7 = vpop.permute.xlu0 %1496 }
 0x505   : > { %2649 = vmatpush3.bf16.msra.mxu1 %v1495_v6 }
 0x506   : > { %2650 = vmatprep.subr.bf16.mxu1 %v3016_v2 }
 0x508   : > { %v1499_v8 = vpop.permute.xlu0 %1498 }
 0x509   : > { %2651 = vmatpush3.bf16.msra.mxu1 %v1497_v7 }
 0x50a   : > { %2652 = vmatprep.subr.bf16.mxu1 %v3016_v2 }
 0x50b   : > { %v2840_v9 = vpop.eup %2839 }
 0x50c   : > { %1417 = vadd.xlane.f32.xlu1 %v2840_v9  ;;  %v1501_v12 = vpop.permute.xlu0 %1500 }
 0x50d   : > { %2653 = vmatpush3.bf16.msra.mxu1 %v1499_v8 }
 0x50e   : > { %2654 = vmatprep.subr.bf16.mxu1 %v3016_v2 }
 0x510   : > { %v1555_v13 = vpop.permute.xlu0 %1554 }
 0x511   : > { %2655 = vmatpush3.bf16.msra.mxu1 %v1501_v12  ;;  %v1574_v26 = vsel %vm1128_vm2, %v1555_v13, 0 }
 0x512   : > { %2656 = vmatprep.subr.bf16.mxu1 %v3016_v2 }
 0x514   : > { %v1559_v15 = vpop.permute.xlu0 %1558 }
 0x515   : > { %2657 = vmatpush3.bf16.msra.mxu1 %v1503_v14  ;;  %v1580_v31 = vsel %vm1128_vm2, %v1559_v15, 0 }
 0x516   : > { %2662 = vmatprep.subr.bf16.mxu1 %v3016_v2 }
 0x518   : > { %v1563_v16 = vpop.permute.xlu0 %1562 }
 0x519   : > { %v1586_v34 = vsel %vm1128_vm2, %v1563_v16, 0 }
 0x51c   : > { %v1567_v17 = vpop.permute.xlu0 %1566 }
 0x51d   : > { %1556 = vrot.lane.b32.xlu1 %v3225_v24, %s3019_s26  ;;  %v1592_v41 = vsel %vm1128_vm2, %v1567_v17, 0 }
 0x520   : > { %v1553_v18 = vpop.permute.xlu0 %1552 }
 0x521   : > { %1560 = vrot.lane.b32.xlu1 %v3236_v39, %s3019_s26 }
 0x524   : > { %v1715_v20 = vpop.permute.xlu0 %1714 }
 0x525   : > { %1564 = vrot.lane.b32.xlu1 %v3245_v50, %s3019_s26  ;;  %2683 = vmatpush3.bf16.msra.mxu0 %v1715_v20 }
 0x526   : > { %2684 = vmatprep.subr.bf16.mxu0 %v3016_v2 }
 0x528   : > { %v1717_v21 = vpop.permute.xlu0 %1716 }
 0x529   : > { %1568 = vrot.lane.b32.xlu1 %v3256_v61, %s3019_s26  ;;  %2685 = vmatpush3.bf16.msra.mxu0 %v1717_v21 }
 0x52a   : > { %2686 = vmatprep.subr.bf16.mxu0 %v3016_v2 }
 0x599   : > { %v1418_v22 = vpop.xlane.xlu1 %1417 }
 0x59a   : > { %2841 = vrcp.f32 %v1418_v22 }
 0x59d   : > { %v1557_v29 = vpop.permute.xlu1 %1556 }
 0x59e   : > { %v1577_v30 = vsel %vm1128_vm2, %v1557_v29, 0 }
 0x5a1   : > { %v1561_v32 = vpop.permute.xlu1 %1560 }
 0x5a2   : > { %v1583_v33 = vsel %vm1128_vm2, %v1561_v32, 0 }
 0x5a4   : > { %v2842_v23 = vpop.eup %2841 }
 0x5a5   : > { %v1420_v27 = vmul.f32 %v2842_v23, %v2840_v9  ;;  %v1565_v35 = vpop.permute.xlu1 %1564 }
 0x5a6   : > { %v1589_v38 = vsel %vm1128_vm2, %v1565_v35, 0 }
 0x5a7   : > { %v1479_v28 = vpack.c.bf16 %v1420_v27, %v1420_v27  ;;  %2392 = vst [vmem:[%s3378_s5 + $0x8] sm:$0xff] %v1420_v27 }
 0x5a9   : > { %2659 = vmatmul.mubr.bf16.vlgmr.msra.gmra.mrb[20].mxu1 %v1479_v28  ;;  %v1569_v42 = vpop.permute.xlu1 %1568 }
 0x5aa   : > { %2663 = vmatpush3.bf16.xpose.msra.mxu1 %v1574_v26  ;;  %2678 = vmatprep.mubr.msk.bf16.mxu1 %vm3017_vm1, %v3016_v2  ;;  %v1595_v43 = vsel %vm1128_vm2, %v1569_v42, 0 }
 0x5ab   : > { %2664 = vmatprep.subr.bf16.mxu1 %v3016_v2 }
 0x5b2   : > { %2665 = vmatpush3.bf16.xpose.msra.mxu1 %v1577_v30 }
 0x5b3   : > { %2666 = vmatprep.subr.bf16.mxu1 %v3016_v2 }
 0x5ba   : > { %2667 = vmatpush3.bf16.xpose.msra.mxu1 %v1580_v31 }
 0x5bb   : > { %2668 = vmatprep.subr.bf16.mxu1 %v3016_v2 }
 0x5c2   : > { %2669 = vmatpush3.bf16.xpose.msra.mxu1 %v1583_v33 }
 0x5c3   : > { %2670 = vmatprep.subr.bf16.mxu1 %v3016_v2 }
 0x5ca   : > { %2671 = vmatpush3.bf16.xpose.msra.mxu1 %v1586_v34 }
 0x5cb   : > { %2672 = vmatprep.subr.bf16.mxu1 %v3016_v2 }
 0x5d2   : > { %2673 = vmatpush3.bf16.xpose.msra.mxu1 %v1589_v38 }
 0x5d3   : > { %2674 = vmatprep.subr.bf16.mxu1 %v3016_v2 }
 0x5da   : > { %2675 = vmatpush3.bf16.xpose.msra.mxu1 %v1592_v41 }
 0x5db   : > { %2676 = vmatprep.subr.bf16.mxu1 %v3016_v2 }
 0x5e2   : > { %2677 = vmatpush3.bf16.xpose.msra.mxu1 %v1595_v43 }
 0x5e3   : > { %2722 = vmatprep.subr.bf16.mxu1 %v3016_v2 }
 0x5e9   : > { %2679 = vmatmul.mubr.msk.bf16.vlgmr.msra.gmra.mrb[24].mxu1 %vm1128_vm2, %v1553_v18 }
 0x5ea   : > { %2738 = vmatprep.mubr.msk.bf16.mxu1 %vm3017_vm1, %v3016_v2 }
 0x67c   : > { %v3467_v44 = vpop.f32.mrb[20].mxu1 }
 0x67d   : > { %v2660_v45 = vpop.f32.mrb[21].mxu1 }
 0x67e   : > { %v1549_v47 = vpop.f32.mrb[22].mxu1 }
 0x67f   : > { %v2661_v52 = vpop.f32.mrb[23].mxu1 }
 0x6bc   : > { %v1631_v53 = vpop.f32.mrb[24].mxu1 }
 0x6bd   : > { %v1637_v54 = vmul.f32 0.35355338, %v1631_v53  ;;  %v2680_v55 = vpop.f32.mrb[25].mxu1 }
 0x6be   : > { %v1634_v56 = vpop.f32.mrb[26].mxu1  ;;  %v2891_v55 = vld [vmem:[%s3206_s25] sm:$0xff] }
 0x6bf   : > { %v2681_v57 = vpop.f32.mrb[27].mxu1  ;;  %v1645_v58 = vadd.f32 %v3318_v19, %v1637_v54 }
 0x6c1   : > { %1646 = vmax.xlane.f32.xlu1 %v1645_v58 }
 0x6d2   : > { %1718 = vrot.lane.b32.xlu1 %v3341_v49, %s3019_s26 }
 0x6d6   : > { %1722 = vrot.lane.b32.xlu1 %v3351_v62, %s3019_s26 }
 0x6da   : > { %1724 = vrot.lane.b32.xlu1 %v3348_v60, %s3019_s26 }
 0x6de   : > { %1726 = vrot.lane.b32.xlu1 %v3359_v11, %s3019_s26 }
 0x6e2   : > { %1780 = vrot.lane.b32.xlu1 %v3227_v25, %s3020_s1 }
 0x6e6   : > { %1784 = vrot.lane.b32.xlu1 %v3238_v40, %s3020_s1 }
 0x6ea   : > { %1788 = vrot.lane.b32.xlu1 %v3247_v51, %s3020_s1  ;;  %v1721_v51 = vpop.permute.xlu0 %1720 }
 0x6ee   : > { %1792 = vrot.lane.b32.xlu1 %v3261_v63, %s3020_s1 }
 0x6f2   : > { %1778 = vrot.lane.b32.xlu1 %v3270_v3, %s3020_s1 }
 0x6f6   : > { %1940 = vrot.lane.b32.xlu1 %v3329_v37, %s3020_s1 }
 0x6fa   : > { %1944 = vrot.lane.b32.xlu1 %v3341_v49, %s3020_s1 }
 0x6fe   : > { %1950 = vrot.lane.b32.xlu1 %v3348_v60, %s3020_s1 }
 0x74e   : > { %v1647_v25 = vpop.xlane.xlu1 %1646 }
 0x74f   : > { %v1648_v40 = vsub.f32 %v1645_v58, %v1647_v25  ;;  %v2409_v58 = vld [vmem:[%s3752_s9 + $0x3] ss:$0 sm:$0xff] }
 0x750   : > { %v1889_v25 = vmul.f32 %v2891_v55, %v2409_v58 }
 0x751   : > { %v1649_v59 = vmul.f32 1.442695, %v1648_v40  ;;  %v2833_v40 = vld [vmem:[%s3754_s11] sm:$0xff]  }
 0x752   : > { %v1719_v0 = vpop.permute.xlu1 %1718 }
 0x753   : > { %2843 = vpow2.f32 %v1649_v59  ;;  %2687 = vmatpush3.bf16.msra.mxu0 %v1719_v0  ;;  %v1890_v59 = vsel %vm699_vm0, %v1889_v25, 0.0  ;;  %v2834_v0 = vld [vmem:[%s3754_s11 + $0x8] sm:$0xff]  }
 0x754   : > { %2688 = vmatprep.subr.bf16.mxu0 %v3016_v2 }
 0x756   : > { %v1723_v63 = vpop.permute.xlu1 %1722 }
 0x757   : > { %2689 = vmatpush3.bf16.msra.mxu0 %v1721_v51 }
 0x758   : > { %2690 = vmatprep.subr.bf16.mxu0 %v3016_v2 }
 0x75a   : > { %v1725_v3 = vpop.permute.xlu1 %1724 }
 0x75b   : > { %2691 = vmatpush3.bf16.msra.mxu0 %v1723_v63 }
 0x75c   : > { %2692 = vmatprep.subr.bf16.mxu0 %v3016_v2 }
 0x75d   : > { %v2844_v37 = vpop.eup %2843 }
 0x75e   : > { %1651 = vadd.xlane.f32.xlu0 %v2844_v37  ;;  %v1727_v49 = vpop.permute.xlu1 %1726 }
 0x75f   : > { %2693 = vmatpush3.bf16.msra.mxu0 %v1725_v3 }
 0x760   : > { %2694 = vmatprep.subr.bf16.mxu0 %v3016_v2 }
 0x762   : > { %v1781_v60 = vpop.permute.xlu1 %1780 }
 0x763   : > { %2695 = vmatpush3.bf16.msra.mxu0 %v1727_v49  ;;  %v1800_v14 = vsel %vm1128_vm2, %v1781_v60, 0  ;;  %v2381_v60 = vld [vmem:[%s3753_s10] ss:$0 sm:$0xff] }
 0x764   : > { %2696 = vmatprep.subr.bf16.mxu0 %v3016_v2 }
 0x766   : > { %v1785_v1 = vpop.permute.xlu1 %1784 }
 0x76a   : > { %v1789_v4 = vpop.permute.xlu1 %1788 }
 0x76b   : > { %v1812_v17 = vsel %vm1128_vm2, %v1789_v4, 0 }
 0x76e   : > { %v1793_v5 = vpop.permute.xlu1 %1792 }
 0x76f   : > { %v1818_v21 = vsel %vm1128_vm2, %v1793_v5, 0 }
 0x772   : > { %v1779_v6 = vpop.permute.xlu1 %1778 }
 0x774   : > { %1728 = vrot.lane.b32.xlu0 %v3356_v10, %s3019_s26  ;;  %s2433_s26 = sshll.u32 %s3182_s21, 5 }
 0x775   : > { %s3587_s25 = scalar_lea.vmem %s3761_s18, %s2433_s26  ;;  %s2131_s26 = sshll.u32 %s3378_s5, 4  ;;  %s3612_s26 = int_to_ptr.vmem [resolvable:$true] %s2131_s26 }
 0x776   : > { %v1941_v7 = vpop.permute.xlu1 %1940  ;;  %s2892_s19 = scalar_lea.vmem %s3612_s26, 512 }
 0x777   : > { %2723 = vmatpush3.bf16.msra.mxu1 %v1941_v7  ;;  %p2893_p11 = scmp.ne.s32.totalorder %s3612_s26, %s2892_s19 }
 0x778   : > { %1782 = vrot.lane.b32.xlu0 %v3225_v24, %s3020_s1  ;;  %2724 = vmatprep.subr.bf16.mxu1 %v3016_v2 }
 0x779   : > { %p2894_p12 = pnand %p2893_p11, %p3164_p5 }
 0x77b   : > { %p2895_p13 = pneg %p2894_p12 }
 0x77c   : > { %1786 = vrot.lane.b32.xlu0 %v3236_v39, %s3020_s1 }
 0x780   : > { %1790 = vrot.lane.b32.xlu0 %v3245_v50, %s3020_s1 }
 0x784   : > { %1794 = vrot.lane.b32.xlu0 %v3256_v61, %s3020_s1  ;;  %v1806_v61 = vsel %vm1128_vm2, %v1785_v1, 0 }
 0x7eb   : > { %v1652_v8 = vpop.xlane.xlu0 %1651 }
 0x7ec   : > { %2845 = vrcp.f32 %v1652_v8  ;;  %v2398_v8 = vld [vmem:[%s3752_s9 + $0x2] ss:$0 sm:$0xff] }
 0x7ef   : > { %v1729_v9 = vpop.permute.xlu0 %1728 }
 0x7f0   : > { %2697 = vmatpush3.bf16.msra.mxu0 %v1729_v9 }
 0x7f1   : > { %2702 = vmatprep.subr.bf16.mxu0 %v3016_v2 }
 0x7f3   : > { %v1783_v39 = vpop.permute.xlu0 %1782 }
 0x7f4   : > { %v1803_v50 = vsel %vm1128_vm2, %v1783_v39, 0 }
 0x7f6   : > { %v2846_v12 = vpop.eup %2845 }
 0x7f7   : > { %v1654_v13 = vmul.f32 %v2846_v12, %v2844_v37  ;;  %v1787_v15 = vpop.permute.xlu0 %1786  ;;  %v1663_v12 = vmul.f32 %v2891_v55, %v2398_v8 }
 0x7f8   : > { %v1809_v16 = vsel %vm1128_vm2, %v1787_v15, 0 }
 0x7f9   : > { %v1713_v24 = vpack.c.bf16 %v1654_v13, %v1654_v13  ;;  %2403 = vst [vmem:[%s3378_s5 + $0x10] sm:$0xff] %v1654_v13  ;;  %v1664_v13 = vsel %vm699_vm0, %v1663_v12, 0.0 }
 0x7fb   : > { %2699 = vmatmul.mubr.bf16.vlgmr.msra.gmra.mrb[28].mxu0 %v1713_v24  ;;  %v1791_v18 = vpop.permute.xlu0 %1790 }
 0x7fc   : > { %2703 = vmatpush3.bf16.xpose.msra.mxu0 %v1800_v14  ;;  %2718 = vmatprep.mubr.msk.bf16.mxu0 %vm3017_vm1, %v3016_v2  ;;  %v1815_v20 = vsel %vm1128_vm2, %v1791_v18, 0 }
 0x7fd   : > { %2704 = vmatprep.subr.bf16.mxu0 %v3016_v2 }
 0x7ff   : > { %v1795_v22 = vpop.permute.xlu0 %1794 }
 0x800   : > { %v1821_v23 = vsel %vm1128_vm2, %v1795_v22, 0 }
 0x804   : > { %2705 = vmatpush3.bf16.xpose.msra.mxu0 %v1803_v50 }
 0x805   : > { %2706 = vmatprep.subr.bf16.mxu0 %v3016_v2 }
 0x80c   : > { %2707 = vmatpush3.bf16.xpose.msra.mxu0 %v1806_v61  ;;  %v2411_v61 = vld [vmem:[%s3753_s10 + $0x3] ss:$0 sm:$0xff] }
 0x80d   : > { %2708 = vmatprep.subr.bf16.mxu0 %v3016_v2 }
 0x814   : > { %2709 = vmatpush3.bf16.xpose.msra.mxu0 %v1809_v16 }
 0x815   : > { %2710 = vmatprep.subr.bf16.mxu0 %v3016_v2 }
 0x81c   : > { %2711 = vmatpush3.bf16.xpose.msra.mxu0 %v1812_v17 }
 0x81d   : > { %2712 = vmatprep.subr.bf16.mxu0 %v3016_v2 }
 0x824   : > { %2713 = vmatpush3.bf16.xpose.msra.mxu0 %v1815_v20 }
 0x825   : > { %2714 = vmatprep.subr.bf16.mxu0 %v3016_v2 }
 0x82c   : > { %2715 = vmatpush3.bf16.xpose.msra.mxu0 %v1818_v21 }
 0x82d   : > { %2716 = vmatprep.subr.bf16.mxu0 %v3016_v2 }
 0x834   : > { %2717 = vmatpush3.bf16.xpose.msra.mxu0 %v1821_v23 }
 0x83b   : > { %2719 = vmatmul.mubr.msk.bf16.vlgmr.msra.gmra.mrb[32].mxu0 %vm1128_vm2, %v1779_v6 }
 0x8ce   : > { %v1772_v27 = vpop.f32.mrb[28].mxu0 }
 0x8cf   : > { %v2700_v28 = vpop.f32.mrb[29].mxu0 }
 0x8d0   : > { %v1775_v26 = vpop.f32.mrb[30].mxu0 }
 0x8d1   : > { %v2701_v29 = vpop.f32.mrb[31].mxu0 }
 0x90e   : > { %v1857_v30 = vpop.f32.mrb[32].mxu0 }
 0x90f   : > { %v1863_v31 = vmul.f32 0.35355338, %v1857_v30  ;;  %v2720_v32 = vpop.f32.mrb[33].mxu0 }
 0x910   : > { %v1860_v33 = vpop.f32.mrb[34].mxu0 }
 0x911   : > { %v2721_v34 = vpop.f32.mrb[35].mxu0  ;;  %v1871_v35 = vadd.f32 %v3318_v19, %v1863_v31 }
 0x913   : > { %1872 = vmax.xlane.f32.xlu0 %v1871_v35 }
 0x929   : > { %1942 = vrot.lane.b32.xlu0 %v3327_v36, %s3020_s1  ;;  %v1945_v36 = vpop.permute.xlu1 %1944 }
 0x92d   : > { %1946 = vrot.lane.b32.xlu0 %v3338_v48, %s3020_s1  ;;  %v1951_v43 = vpop.permute.xlu1 %1950 }
 0x931   : > { %1948 = vrot.lane.b32.xlu0 %v3351_v62, %s3020_s1 }
 0x935   : > { %1952 = vrot.lane.b32.xlu0 %v3359_v11, %s3020_s1 }
 0x939   : > { %2005 = vrot.lane.b32.xlu0 %v3467_v44, %s3768_s20 }
 0x9a0   : > { %v1873_v38 = vpop.xlane.xlu0 %1872 }
 0x9a1   : > { %v1874_v41 = vsub.f32 %v1871_v35, %v1873_v38  ;;  %v3024_v38 = vmov 0  }
 0x9a2   : > { %2809 = vset.pattern.permute.xlu0 %v3024_v38  ;;  %2810 = vset.pattern.permute.xlu1 %v3024_v38 }
 0x9a3   : > { %v1875_v19 = vmul.f32 1.442695, %v1874_v41 }
 0x9a4   : > { %v1943_v42 = vpop.permute.xlu0 %1942 }
 0x9a5   : > { %2847 = vpow2.f32 %v1875_v19  ;;  %2725 = vmatpush3.bf16.msra.mxu1 %v1943_v42 }
 0x9a6   : > { %2726 = vmatprep.subr.bf16.mxu1 %v3016_v2 }
 0x9a8   : > { %v1947_v48 = vpop.permute.xlu0 %1946 }
 0x9a9   : > { %2727 = vmatpush3.bf16.msra.mxu1 %v1945_v36 }
 0x9aa   : > { %2728 = vmatprep.subr.bf16.mxu1 %v3016_v2 }
 0x9ac   : > { %v1949_v11 = vpop.permute.xlu0 %1948 }
 0x9ad   : > { %2729 = vmatpush3.bf16.msra.mxu1 %v1947_v48 }
 0x9ae   : > { %2730 = vmatprep.subr.bf16.mxu1 %v3016_v2 }
 0x9af   : > { %v2848_v62 = vpop.eup %2847 }
 0x9b0   : > { %1877 = vadd.xlane.f32.xlu1 %v2848_v62  ;;  %v1953_v44 = vpop.permute.xlu0 %1952 }
 0x9b1   : > { %2731 = vmatpush3.bf16.msra.mxu1 %v1949_v11 }
 0x9b2   : > { %2732 = vmatprep.subr.bf16.mxu1 %v3016_v2 }
 0x9b4   : > { %v2006_v19 = vpop.permute.xlu0 %2005 }
 0x9b5   : > { %2733 = vmatpush3.bf16.msra.mxu1 %v1951_v43  ;;  %v2016_v42 = vsel %vm1128_vm2, %v3402_v46, %v2006_v19  ;;  %v2389_v43 = vld [vmem:[%s3753_s10 + $0x1] ss:$0 sm:$0xff] }
 0x9b6   : > { %2734 = vmatprep.subr.bf16.mxu1 %v3016_v2 }
 0x9b9   : > { %2735 = vmatpush3.bf16.msra.mxu1 %v1953_v44 }
 0x9ba   : > { %2736 = vmatprep.subr.bf16.mxu1 %v3016_v2 }
 0x9c1   : > { %1954 = vrot.lane.b32.xlu1 %v3356_v10, %s3020_s1  ;;  %v2380_v10 = vld [vmem:[%s3752_s9] ss:$0 sm:$0xff]  ;;  %s2094_s1 = sand.u32 1, %s3145_s0  }
 0x9c2   : > { %v1221_v56 = vmul.f32 %v2891_v55, %v2380_v10 }
 0x9c4   : > { %v1222_v57 = vsel %vm699_vm0, %v1221_v56, 0.0 }
 0x9c5   : > { %2009 = vrot.lane.b32.xlu1 %v1772_v27, %s3022_s3  ;;  %s3770_s3 = sshll.u32 %s3145_s0, 9 }
 0x9c6   : > { %s3621_s24 = scalar_lea.hbm %s3759_s16, %s3770_s3 }
 0x9e9   : > { %1223 = vadd.xlane.f32.xlu1 %v1222_v57 }
 0x9ed   : > { %1891 = vadd.xlane.f32.xlu1 %v1890_v59 }
 0xa3d   : > { %v1878_v45 = vpop.xlane.xlu1 %1877 }
 0xa3e   : > { %2849 = vrcp.f32 %v1878_v45 }
 0xa41   : > { %v1955_v47 = vpop.permute.xlu1 %1954 }
 0xa42   : > { %2737 = vmatpush3.bf16.msra.mxu1 %v1955_v47  ;;  %v2400_v47 = vld [vmem:[%s3753_s10 + $0x2] ss:$0 sm:$0xff] }
 0xa43   : > { %2742 = vmatprep.subr.bf16.mxu1 %v3016_v2 }
 0xa45   : > { %v2010_v49 = vpop.permute.xlu1 %2009 }
 0xa46   : > { %v2018_v36 = vsel %vm2017_vm4, %v2016_v42, %v2010_v49 }
 0xa48   : > { %v2850_v52 = vpop.eup %2849 }
 0xa49   : > { %v1880_v53 = vmul.f32 %v2850_v52, %v2848_v62 }
 0xa4b   : > { %v1939_v54 = vpack.c.bf16 %v1880_v53, %v1880_v53  ;;  %2414 = vst [vmem:[%s3378_s5 + $0x18] sm:$0xff] %v1880_v53  ;;  %s3025_s5 = smov [#allocation4]  }
 0xa4c   : > { %s2896_s22 = sshll.u32 %s3025_s5, 4  ;;  %s2897_s22 = int_to_ptr.vmem [resolvable:$false] %s2896_s22 }
 0xa4d   : > { %2739 = vmatmul.mubr.bf16.vlgmr.msra.gmra.mrb[28].mxu1 %v1939_v54  ;;  %s2898_s20 = scalar_lea.vmem %s2897_s22, 1024  ;;  %p2899_p0 = scmp.lt.s32.totalorder %s3612_s26, %s2897_s22 }
 0xa4e   : > { %2746 = vmatprep.mubr.msk.bf16.mxu1 %vm3017_vm1, %v3016_v2  ;;  %2743 = vmatpush3.bf16.msra.mxu1 %v2833_v40  ;;  %p2900_p1 = scmp.lt.s32.totalorder %s2898_s20, %s2892_s19 }
 0xa4f   : > { %2744 = vmatprep.subr.bf16.mxu1 %v3016_v2  ;;  %v2387_v2 = vld [vmem:[%s3752_s9 + $0x1] ss:$0 sm:$0xff] }
 0xa50   : > { %v1429_v6 = vmul.f32 %v2891_v55, %v2387_v2  ;;  %p2901_p2 = por %p2900_p1, %p2899_p0 }
 0xa52   : > { %2745 = vmatpush3.bf16.msra.mxu1 %v2834_v0  ;;  %v1430_v9 = vsel %vm699_vm0, %v1429_v6, 0.0  ;;  %p2902_p3 = pnand %p2901_p2, %p2895_p13 }
 0xa76   : > { %v1224_v1 = vpop.xlane.xlu1 %1223 }
 0xa77   : > { %v1232_v4 = vadd.f32 %v2381_v60, %v1224_v1 }
 0xa79   : > { %v2382_v5 = vmul.f32 -5.0, %v1232_v4 }
 0xa7a   : > { %v1892_v15 = vpop.xlane.xlu1 %1891 }
 0xa7b   : > { %v1235_v7 = vmul.f32 1.442695, %v2382_v5  ;;  %v1901_v16 = vadd.f32 %v2411_v61, %v1892_v15 }
 0xa7d   : > { %2851 = vpow2.f32 %v1235_v7  ;;  %v2412_v18 = vmul.f32 -5.0, %v1901_v16 }
 0xa7f   : > { %v1904_v21 = vmul.f32 1.442695, %v2412_v18 }
 0xa87   : > { %v2852_v24 = vpop.eup %2851 }
 0xa88   : > { %v1237_v14 = vadd.f32 1.0, %v2852_v24 }
 0xa8a   : > { %2853 = vrcp.f32 %v1237_v14 }
 0xa94   : > { %v2854_v39 = vpop.eup %2853 }
 0xa95   : > { %v1240_v50 = vadd.f32 1e-05, %v2854_v39 }
 0xa97   : > { %v1241_v17 = vmul.f32 1.0986123, %v1240_v50 }
 0xa99   : > { %v1242_v20 = vmul.f32 1.442695, %v1241_v17 }
 0xa9b   : > { %2855 = vpow2.f32 %v1242_v20 }
 0xa9c   : > { %2857 = vpow2.f32 %v1904_v21 }
 0xaa5   : > { %v2856_v22 = vpop.eup %2855 }
 0xaa6   : > { %v2858_v23 = vpop.eup %2857  ;;  %v2383_v27 = vadd.f32 -1.0, %v2856_v22 }
 0xaa7   : > { %v1906_v28 = vadd.f32 1.0, %v2858_v23 }
 0xaa8   : > { %1267 = vst.msk [vmem:[%s3587_s25] sm:$0xff] %vm1266_vm3, %v2383_v27 }
 0xaa9   : > { %2859 = vrcp.f32 %v1906_v28 }
 0xaaa   : > { %2861 = vrcp.f32 %v2383_v27 }
 0xab3   : > { %v2860_v26 = vpop.eup %2859 }
 0xab4   : > { %v1909_v29 = vadd.f32 1e-05, %v2860_v26  ;;  %v3591_v32 = vpop.eup %2861 }
 0xab5   : > { %v1247_v35 = vmul.f32 -0.5, %v3591_v32  ;;  %v1246_v39 = vmul.f32 0.3989423, %v3591_v32 }
 0xab6   : > { %v1910_v30 = vmul.f32 1.0986123, %v1909_v29 }
 0xab7   : > { %v1248_v41 = vmul.f32 %v3591_v32, %v1247_v35 }
 0xab8   : > { %v1911_v31 = vmul.f32 1.442695, %v1910_v30 }
 0xaba   : > { %2863 = vpow2.f32 %v1911_v31 }
 0xac4   : > { %v2864_v33 = vpop.eup %2863 }
 0xac5   : > { %v2413_v34 = vadd.f32 -1.0, %v2864_v33 }
 0xac7   : > { %2416 = vst.msk [vmem:[%s3587_s25 + $0x18] sm:$0xff] %vm1266_vm3, %v2413_v34 }
 0xb20   : > { %v1998_v51 = vpop.f32.mrb[28].mxu1 }
 0xb21   : > { %2013 = vrot.lane.b32.xlu0 %v1998_v51, %s3023_s23  ;;  %v2740_v63 = vpop.f32.mrb[29].mxu1  ;;  %s3623_s23 = scalar_lea.sflag [#allocation5], %s2094_s1 }
 0xb22   : > { %v2001_v3 = vpop.f32.mrb[30].mxu1 }
 0xb23   : > { %v2741_v37 = vpop.f32.mrb[31].mxu1 }
 0xb40   : > { %1431 = vadd.xlane.f32.xlu0 %v1430_v9 }
 0xb44   : > { %1665 = vadd.xlane.f32.xlu0 %v1664_v13 }
 0xb5a   : > { %1252 = vperm.xlu0 %2809, %v1248_v41  }
 0xb93   : > { %v2014_v48 = vpop.permute.xlu0 %2013 }
 0xb94   : > { %v2020_v62 = vsel %vm2019_vm5, %v2018_v36, %v2014_v48 }
 0xb95   : > { %v2021_v11 = vpack.c.bf16 %v2020_v62, %v2020_v62 }
 0xb97   : > { %2747 = vmatmul.mubr.msk.bf16.vlgmr.msra.gmra.mrb[32].mxu1 %vm699_vm0, %v2021_v11 }
 0xbcd   : > { %v1432_v44 = vpop.xlane.xlu0 %1431 }
 0xbce   : > { %v1441_v45 = vadd.f32 %v2389_v43, %v1432_v44 }
 0xbd0   : > { %v2390_v52 = vmul.f32 -5.0, %v1441_v45 }
 0xbd1   : > { %v1666_v53 = vpop.xlane.xlu0 %1665 }
 0xbd2   : > { %v1444_v54 = vmul.f32 1.442695, %v2390_v52  ;;  %v1675_v46 = vadd.f32 %v2400_v47, %v1666_v53 }
 0xbd4   : > { %2865 = vpow2.f32 %v1444_v54  ;;  %v2401_v10 = vmul.f32 -5.0, %v1675_v46 }
 0xbd6   : > { %v1678_v55 = vmul.f32 1.442695, %v2401_v10 }
 0xbd8   : > { %2867 = vpow2.f32 %v1678_v55 }
 0xbde   : > { %v2866_v56 = vpop.eup %2865 }
 0xbdf   : > { %v1446_v57 = vadd.f32 1.0, %v2866_v56 }
 0xbe1   : > { %2869 = vrcp.f32 %v1446_v57 }
 0xbe2   : > { %v2868_v58 = vpop.eup %2867 }
 0xbe3   : > { %v1680_v25 = vadd.f32 1.0, %v2868_v58 }
 0xbe5   : > { %2871 = vrcp.f32 %v1680_v25 }
 0xbeb   : > { %v2870_v40 = vpop.eup %2869 }
 0xbec   : > { %v1449_v59 = vadd.f32 1e-05, %v2870_v40 }
 0xbee   : > { %v1450_v0 = vmul.f32 1.0986123, %v1449_v59 }
 0xbef   : > { %v2872_v51 = vpop.eup %2871 }
 0xbf0   : > { %v1451_v63 = vmul.f32 1.442695, %v1450_v0  ;;  %v1683_v3 = vadd.f32 1e-05, %v2872_v51 }
 0xbf2   : > { %2873 = vpow2.f32 %v1451_v63  ;;  %v1684_v37 = vmul.f32 1.0986123, %v1683_v3 }
 0xbf4   : > { %v1685_v49 = vmul.f32 1.442695, %v1684_v37 }
 0xbf6   : > { %2875 = vpow2.f32 %v1685_v49 }
 0xbfc   : > { %v2874_v60 = vpop.eup %2873 }
 0xbfd   : > { %v2391_v1 = vadd.f32 -1.0, %v2874_v60 }
 0xbff   : > { %2877 = vrcp.f32 %v2391_v1  ;;  %2394 = vst.msk [vmem:[%s3587_s25 + $0x8] sm:$0xff] %vm1266_vm3, %v2391_v1 }
 0xc00   : > { %v2876_v4 = vpop.eup %2875  ;;  %2879 = vrcp.f32 %v2413_v34 }
 0xc01   : > { %v2402_v2 = vadd.f32 -1.0, %v2876_v4 }
 0xc03   : > { %2881 = vrcp.f32 %v2402_v2  ;;  %2405 = vst.msk [vmem:[%s3587_s25 + $0x10] sm:$0xff] %vm1266_vm3, %v2402_v2 }
 0xc09   : > { %v2878_v5 = vpop.eup %2877 }
 0xc0a   : > { %v1456_v6 = vmul.f32 -0.5, %v2878_v5  ;;  %v2880_v7 = vpop.eup %2879  ;;  %v1455_v50 = vmul.f32 0.3989423, %v2878_v5 }
 0xc0b   : > { %v1916_v24 = vmul.f32 -0.5, %v2880_v7  ;;  %v1915_v15 = vmul.f32 0.3989423, %v2880_v7 }
 0xc0c   : > { %v1457_v8 = vmul.f32 %v2878_v5, %v1456_v6 }
 0xc0d   : > { %v2882_v9 = vpop.eup %2881  ;;  %v1917_v14 = vmul.f32 %v2880_v7, %v1916_v24 }
 0xc0e   : > { %1461 = vperm.xlu1 %2810, %v1457_v8   ;;  %v1690_v12 = vmul.f32 -0.5, %v2882_v9  ;;  %v1689_v61 = vmul.f32 0.3989423, %v2882_v9 }
 0xc10   : > { %v1691_v13 = vmul.f32 %v2882_v9, %v1690_v12 }
 0xc12   : > { %1695 = vperm.xlu1 %2810, %v1691_v13  }
 0xc16   : > { %1921 = vperm.xlu1 %2810, %v1917_v14  }
 0xc1a   : > { %1260 = vperm.xlu1 %2810, %v1246_v39  }
 0xc1e   : > { %1469 = vperm.xlu1 %2810, %v1455_v50  }
 0xc22   : > { %1703 = vperm.xlu1 %2810, %v1689_v61  }
 0xc26   : > { %1929 = vperm.xlu1 %2810, %v1915_v15  }
 0xc27   : > { %2905 = shalt.err (!%p2902_p3)
}
 0xc28   : > { %s2906_s1 = scalar_lea.hbm %s3621_s24, 512  ;;  %s2910_s5 = scalar_lea.hbm %s3759_s16, 1024 }
 0xc29   : > { %p2907_p4 = scmp.ne.s32.totalorder %s3621_s24, %s2906_s1  ;;  %p2911_p9 = scmp.lt.u32.totalorder %s3621_s24, %s3759_s16 }
 0xc2a   : > { %p2912_p10 = scmp.lt.u32.totalorder %s2910_s5, %s2906_s1  ;;  %p2914_p12 = scmp.lt.u32.totalorder %s2906_s1, %s3621_s24 }
 0xc2b   : > { %p2908_p7 = pnand %p2907_p4, %p3164_p5 }
 0xc2c   : > { %p2913_p11 = por %p2912_p10, %p2911_p9 }
 0xc2d   : > { %p2909_p8 = pneg %p2908_p7 }
 0xc2e   : > { %p2915_p13 = por %p2914_p12, %p2913_p11 }
 0xc30   : > { %p2916_p0 = pnand %p2915_p13, %p2909_p8 }
 0xc32   : > { %2919 = shalt.err (!%p2916_p0)
}
 0xc33   : > { %s3026_s20 = smov 128   ;;  %s3793_s19 = smov 8   ;;  %v2417_v16 = vld [vmem:[%s3755_s12] ss:$0 sm:$0xff] }
 0xc34   : > { %2751 = dma.vmem_to_hbm [thread:$0]  (%p3164_p5), %s3612_s26, 512, %s3621_s24, %s3623_s23, %s3026_s20, %s3026_s20, %s3793_s19  }
 0xc35   : > { %s2326_s3 = sshll.u32 %s3373_s29, 3  ;;  %s2424_s1 = sshll.u32 %s3145_s0, 7 }
 0xc36   : > { %s600_s5 = scalar_lea.vmem [#allocation2], %s2326_s3  ;;  %s3658_s7 = scalar_lea.hbm %s3758_s15, %s2424_s1 }
 0xc37   : > { %s2118_s22 = sshll.u32 %s600_s5, 4  ;;  %s2090_s26 = scalar_lea.sflag [#allocation3], %s3373_s29  ;;  %s3660_s22 = int_to_ptr.vmem [resolvable:$true] %s2118_s22 }
 0xc38   : > { %s2920_s24 = scalar_lea.vmem %s3660_s22, 128  ;;  %s3027_s3 = smov [#allocation2]  }
 0xc39   : > { %p2921_p1 = scmp.ne.s32.totalorder %s3660_s22, %s2920_s24  ;;  %s2924_s25 = sshll.u32 %s3027_s3, 4  ;;  %s2925_s25 = int_to_ptr.vmem [resolvable:$false] %s2924_s25 }
 0xc3a   : > { %s2926_s4 = scalar_lea.vmem %s2925_s25, 256  ;;  %p2927_p4 = scmp.lt.s32.totalorder %s3660_s22, %s2925_s25 }
 0xc3b   : > { %p2922_p2 = pnand %p2921_p1, %p3164_p5  ;;  %p2928_p7 = scmp.lt.s32.totalorder %s2926_s4, %s2920_s24 }
 0xc3d   : > { %p2923_p3 = pneg %p2922_p2  ;;  %p2929_p8 = por %p2928_p7, %p2927_p4 }
 0xc3f   : > { %p2930_p9 = pnand %p2929_p8, %p2923_p3 }
 0xc6a   : > { %v2082_v17 = vpop.f32.mrb[32].mxu1 }
 0xc6b   : > { %v2083_v18 = vadd.f32 %v2417_v16, %v2082_v17  ;;  %v2748_v20 = vpop.f32.mrb[33].mxu1 }
 0xc6c   : > { %v2085_v21 = vpop.f32.mrb[34].mxu1 }
 0xc6d   : > { %v2749_v22 = vpop.f32.mrb[35].mxu1  ;;  %2088 = vst.msk [vmem:[%s600_s5] sm:$0xff] %vm699_vm0, %v2083_v18 }
 0xc6e   : > { %2933 = shalt.err (!%p2930_p9)
}
 0xc6f   : > { %s2934_s6 = scalar_lea.hbm %s3658_s7, 128  ;;  %s2938_s5 = scalar_lea.hbm %s3758_s15, 256 }
 0xc70   : > { %p2935_p10 = scmp.ne.s32.totalorder %s3658_s7, %s2934_s6  ;;  %p2939_p13 = scmp.lt.u32.totalorder %s3658_s7, %s3758_s15 }
 0xc71   : > { %p2940_p0 = scmp.lt.u32.totalorder %s2938_s5, %s2934_s6  ;;  %p2942_p2 = scmp.lt.u32.totalorder %s2934_s6, %s3658_s7 }
 0xc72   : > { %p2936_p11 = pnand %p2935_p10, %p3164_p5 }
 0xc73   : > { %p2941_p1 = por %p2940_p0, %p2939_p13 }
 0xc74   : > { %p2937_p12 = pneg %p2936_p11 }
 0xc75   : > { %p2943_p3 = por %p2942_p2, %p2941_p1 }
 0xc77   : > { %p2944_p4 = pnand %p2943_p3, %p2937_p12 }
 0xc79   : > { %2947 = shalt.err (!%p2944_p4)
}
 0xc7a   : > { %2750 = dma.vmem_to_hbm [thread:$0]  (%p3164_p5), %s3660_s22, 128, %s3658_s7, %s2090_s26   ;;  %v1249_v23 = vld [vmem:[%s3756_s13] sm:$0xff]  ;;  %v1253_v27 = vpop.permute.xlu0 %1252 }
 0xc7b   : > { %v1255_v28 = vmul.f32 %v1253_v27, %v1249_v23  ;;  %s3794_s7 = sshll.u32 %s3373_s29, 5  ;;  %s3795_s29 = sshll.u32 %s3145_s0, 9 }
 0xc7c   : > { %s614_s22 = scalar_lea.vmem [#allocation6], %s3794_s7  ;;  %s3697_s1 = scalar_lea.hbm %s3760_s17, %s3795_s29 }
 0xc7d   : > { %v1256_v26 = vmul.f32 1.442695, %v1255_v28  ;;  %s2147_s26 = sshll.u32 %s614_s22, 4  ;;  %s3028_s3 = smov [#allocation6]   ;;  %s3690_s26 = int_to_ptr.vmem [resolvable:$true] %s2147_s26 }
 0xc7e   : > { %s2948_s5 = scalar_lea.vmem %s3690_s26, 512  ;;  %s2952_s25 = sshll.u32 %s3028_s3, 4  ;;  %s2953_s25 = int_to_ptr.vmem [resolvable:$false] %s2952_s25 }
 0xc7f   : > { %2883 = vpow2.f32 %v1256_v26  ;;  %p2949_p7 = scmp.ne.s32.totalorder %s3690_s26, %s2948_s5  ;;  %s2954_s24 = scalar_lea.vmem %s2953_s25, 1024 }
 0xc80   : > { %p2955_p10 = scmp.lt.s32.totalorder %s3690_s26, %s2953_s25  ;;  %p2956_p11 = scmp.lt.s32.totalorder %s2954_s24, %s2948_s5 }
 0xc81   : > { %p2950_p8 = pnand %p2949_p7, %p3164_p5 }
 0xc82   : > { %p2957_p12 = por %p2956_p11, %p2955_p10 }
 0xc83   : > { %p2951_p9 = pneg %p2950_p8 }
 0xc85   : > { %p2958_p13 = pnand %p2957_p12, %p2951_p9 }
 0xc89   : > { %v2884_v41 = vpop.eup %2883 }
 0xc8d   : > { %v1462_v29 = vpop.permute.xlu1 %1461 }
 0xc8e   : > { %v1464_v30 = vmul.f32 %v1462_v29, %v1249_v23 }
 0xc90   : > { %v1465_v31 = vmul.f32 1.442695, %v1464_v30 }
 0xc91   : > { %v1696_v32 = vpop.permute.xlu1 %1695 }
 0xc92   : > { %2885 = vpow2.f32 %v1465_v31  ;;  %v1698_v33 = vmul.f32 %v1696_v32, %v1249_v23 }
 0xc94   : > { %v1699_v34 = vmul.f32 1.442695, %v1698_v33 }
 0xc95   : > { %v1922_v35 = vpop.permute.xlu1 %1921 }
 0xc96   : > { %2887 = vpow2.f32 %v1699_v34  ;;  %v1924_v38 = vmul.f32 %v1922_v35, %v1249_v23 }
 0xc98   : > { %v1925_v19 = vmul.f32 1.442695, %v1924_v38 }
 0xc99   : > { %v1261_v42 = vpop.permute.xlu1 %1260 }
 0xc9a   : > { %2889 = vpow2.f32 %v1925_v19  ;;  %v1263_v36 = vmul.f32 %v2884_v41, %v1261_v42 }
 0xc9c   : > { %v2886_v48 = vpop.eup %2885  ;;  %1265 = vst [vmem:[%s614_s22] sm:$0xff] %v1263_v36 }
 0xc9d   : > { %v1470_v62 = vpop.permute.xlu1 %1469 }
 0xc9e   : > { %v1472_v11 = vmul.f32 %v2886_v48, %v1470_v62 }
 0xca0   : > { %v2888_v43 = vpop.eup %2887  ;;  %2393 = vst [vmem:[%s614_s22 + $0x8] sm:$0xff] %v1472_v11 }
 0xca1   : > { %v1704_v44 = vpop.permute.xlu1 %1703 }
 0xca2   : > { %v1706_v45 = vmul.f32 %v2888_v43, %v1704_v44 }
 0xca4   : > { %v2890_v47 = vpop.eup %2889  ;;  %2404 = vst [vmem:[%s614_s22 + $0x10] sm:$0xff] %v1706_v45 }
 0xca5   : > { %v1930_v52 = vpop.permute.xlu1 %1929 }
 0xca6   : > { %v1932_v53 = vmul.f32 %v2890_v47, %v1930_v52 }
 0xca8   : > { %2415 = vst [vmem:[%s614_s22 + $0x18] sm:$0xff] %v1932_v53 }
 0xca9   : > { %2961 = shalt.err (!%p2958_p13)
}
 0xcaa   : > { %s2962_s0 = scalar_lea.hbm %s3697_s1, 512  ;;  %s2966_s22 = scalar_lea.hbm %s3760_s17, 1024 }
 0xcab   : > { %p2963_p0 = scmp.ne.s32.totalorder %s3697_s1, %s2962_s0  ;;  %p2967_p3 = scmp.lt.u32.totalorder %s3697_s1, %s3760_s17 }
 0xcac   : > { %p2968_p4 = scmp.lt.u32.totalorder %s2966_s22, %s2962_s0  ;;  %p2970_p8 = scmp.lt.u32.totalorder %s2962_s0, %s3697_s1 }
 0xcad   : > { %p2964_p1 = pnand %p2963_p0, %p3164_p5 }
 0xcae   : > { %p2969_p7 = por %p2968_p4, %p2967_p3 }
 0xcaf   : > { %p2965_p2 = pneg %p2964_p1 }
 0xcb0   : > { %p2971_p9 = por %p2970_p8, %p2969_p7 }
 0xcb2   : > { %p2972_p10 = pnand %p2971_p9, %p2965_p2 }
 0xcb4   : > { %2975 = shalt.err (!%p2972_p10)
}
 0xcb5   : > { %2752 = dma.vmem_to_hbm [thread:$0]  (%p3164_p5), %s3690_s26, 512, %s3697_s1, %s3623_s23, %s3026_s20, %s3026_s20, %s3793_s19  }
 0xcb6 PF: > { %p2766_p11 = scmp.ge.s32.totalorder %s3014_s30, 2  ;;  %s2165_s5 = sand.u32 1, %s3002_s27  }
 0xcb7   : > { %s2166_s3 = scalar_lea.sflag [#allocation3], %s2165_s5 }
 0xcb8   : > { %p2757_p12 = pnand %p2766_p11, %p3168_p6 }
 0xcba   : > { %2993 = dma.done.wait (!%p2757_p12), %s2166_s3, 128  }
 0xcbb   : > { %2995 = vsyncadd (!%p2757_p12), %s2166_s3, 4294967168  ;;  %s3797_s2 = sadd.s32 4294967294, %s3014_s30  }
 0xcbc   : > { %s2174_s25 = sand.u32 1, %s3797_s2  }
 0xcbd   : > { %s2175_s24 = scalar_lea.sflag [#allocation5], %s2174_s25 }
 0xcbe   : > { %2997 = dma.done.wait (!%p2757_p12), %s2175_s24, 1024  }
 0xcbf   : > { %2999 = vsyncadd (!%p2757_p12), %s2175_s24, 4294966272  ;;  %s3798_s30 = sld [smem:[#allocation10_spill]]  ;;  %s3799_s23 = sld [smem:[#allocation9_spill]] }
 0xcc0   : > { %s3800_s29 = sld [smem:[#allocation11_spill]]  ;;  %s3801_s27 = smov %s3006_s28 }
 0xcc5   : > { %p32_p5 = scmp.ge.s32.totalorder %s3798_s30, 4   ;;  %s3802_s28 = smov %s3799_s23 }
 0xcc7   :  { %34 = sbr.rel (!%p32_p5) target bundleno = 14 (0xe), region = 180 }
 0xcce   :  { %2197 = vsyncpa [#allocation3], 1 }
 0xccf   :  { %2199 = vsyncpa [#allocation3 + $0x1], 1 }
 0xcd0   :  { %2200 = vsyncpa [#allocation5], 1 }
 0xcd1   :  { %2202 = vsyncpa [#allocation5 + $0x1], 1 }

</bundles_post_ra>
